<compile_context>
chip_gen: v7x
topology: tpu7x:2x2x1
jax: 0.10.0
libtpu: 0.0.40
codegen_flags: <defaults>
</compile_context>

<pallas_src>
import jax
import jax.numpy as jnp
from jax import lax
from jax.experimental import pallas as pl
from jax.experimental.pallas import tpu as pltpu

EPS = 1e-5


def _round_up(a, b):
    return (a + b - 1) // b * b


def _cdiv(a, b):
    return -(-a // b)


def _cp(n_grid_dims):
    return pltpu.CompilerParams(
        dimension_semantics=("parallel",) * n_grid_dims,
        vmem_limit_bytes=32 * 1024 * 1024,
    )


# ----------------------------- kernels ---------------------------------


def squeeze_kernel(w_ref, x_ref, y_ref, s1_ref, s2_ref):
    """1x1x1 conv as [Cs,Cin]@[Cin,MT] matmul; bf16 pre-BN out + BN partials."""
    y = jnp.dot(w_ref[...], x_ref[0], preferred_element_type=jnp.float32)
    y_ref[...] = y.astype(y_ref.dtype)[None]                       # bf16 pre-BN
    s1_ref[...] = jnp.sum(y, axis=1, keepdims=True)[None, None]    # [1,1,Cs,1]
    s2_ref[...] = jnp.sum(y * y, axis=1, keepdims=True)[None, None]


def bn_relu_kernel(y_ref, scale_ref, shift_ref, o_ref):
    """Apply finalized squeeze BN affine + ReLU (lane-dense, tiled)."""
    y = y_ref[0].astype(jnp.float32) * scale_ref[...] + shift_ref[...]
    o_ref[...] = jnp.maximum(y, 0.0).astype(o_ref.dtype)[None]


def make_expand_kernel(offsets, mq):
    """3x3x3 expand conv (+ folded 1x1x1 centre tap) over one padded image.

    One K = 27*Cs matmul: the 27 shifted windows of the padded squeeze
    activation are stacked along the contraction axis, so the MXU accumulates
    all taps internally. Stats are masked; the stored slab is the raw acc.
    """
    def expand_kernel(sq_ref, w_ref, mask_ref, e_ref, s1_ref, s2_ref):
        sq = sq_ref[0].astype(jnp.float32)                          # [Cs,P_ext]
        cols = jnp.concatenate([sq[:, off:off + mq] for off in offsets],
                               axis=0)                              # [27*Cs,Mq]
        acc = jnp.dot(w_ref[...], cols,
                      preferred_element_type=jnp.float32)           # [Ce, Mq]
        e_ref[...] = acc.astype(e_ref.dtype)[None]                  # bf16 pre-BN
        m = mask_ref[...]                                           # [1, Mq]
        s1_ref[...] = jnp.sum(acc * m, axis=1, keepdims=True)[None]
        s2_ref[...] = jnp.sum(acc * acc * m, axis=1, keepdims=True)[None]

    return expand_kernel


def make_finalize_kernel(use_bypass):
    """Expand BN affine (+ bypass) + ReLU on the padded-grid layout."""
    if use_bypass:
        def finalize_kernel(e_ref, scale_ref, shift_ref, x_ref, o_ref):
            y = e_ref[0].astype(jnp.float32) * scale_ref[...] + shift_ref[...]
            y = y + x_ref[0]
            o_ref[...] = jnp.maximum(y, 0.0)[None]
    else:
        def finalize_kernel(e_ref, scale_ref, shift_ref, o_ref):
            y = e_ref[0].astype(jnp.float32) * scale_ref[...] + shift_ref[...]
            o_ref[...] = jnp.maximum(y, 0.0)[None]
    return finalize_kernel


# ----------------------------- wrapper ----------------------------------


def fire_forward(x, params, use_bypass=False):
    """x: [N, Cin, D, H, W] float32 (PyTorch NCDHW). Returns NCDHW output."""
    N, Cin, D, H, W = x.shape
    M_img = D * H * W
    M = N * M_img

    w_sq, _b_sq, g_sq, beta_sq = params["squeeze"]
    w_e1, _b_e1, g_e1, beta_e1 = params["expand1x1"]
    w_e3, _b_e3, g_e3, beta_e3 = params["expand3x3"]      # [3,3,3,Cs,Ce3]
    Cs = w_sq.shape[1]
    Ce1 = w_e1.shape[1]
    Ce3 = w_e3.shape[-1]
    Ce = Ce1 + Ce3
    if use_bypass:
        assert Cin == Ce, "bypass requires inplanes == expand1x1 + expand3x3"

    # per-image lane tiling for the squeeze kernels (lane axis = D*H*W)
    G_img = max(1, _cdiv(_round_up(M_img, 128), 4096))
    MT = _round_up(_cdiv(M_img, G_img), 128)
    M_img_pad = MT * G_img

    x = x.astype(jnp.float32)
    x_r = x.reshape(N, Cin, M_img)                       # free (contiguous)
    if M_img_pad != M_img:
        x_r = jnp.pad(x_r, ((0, 0), (0, 0), (0, M_img_pad - M_img)))
    w_sqT = w_sq.T                                       # [Cs, Cin] f32

    # ---- kernel 1: squeeze conv (bf16 pre-BN out) + partial BN stats ----
    y_sq, s1, s2 = pl.pallas_call(
        squeeze_kernel,
        out_shape=(jax.ShapeDtypeStruct((N, Cs, M_img_pad), jnp.bfloat16),
                   jax.ShapeDtypeStruct((N, G_img, Cs, 1), jnp.float32),
                   jax.ShapeDtypeStruct((N, G_img, Cs, 1), jnp.float32)),
        grid=(N, G_img),
        in_specs=[pl.BlockSpec((Cs, Cin), lambda n, g: (0, 0)),
                  pl.BlockSpec((1, Cin, MT), lambda n, g: (n, 0, g))],
        out_specs=(pl.BlockSpec((1, Cs, MT), lambda n, g: (n, 0, g)),
                   pl.BlockSpec((1, 1, Cs, 1), lambda n, g: (n, g, 0, 0)),
                   pl.BlockSpec((1, 1, Cs, 1), lambda n, g: (n, g, 0, 0))),
        compiler_params=_cp(2),
    )(w_sqT, x_r)

    # finalize squeeze BN (per-channel scalars; conv bias exactly cancels)
    sum1 = jnp.sum(s1, axis=(0, 1))[:, 0]
    sum2 = jnp.sum(s2, axis=(0, 1))[:, 0]
    mean1 = sum1 / M
    var1 = jnp.maximum(sum2 / M - mean1 * mean1, 0.0)
    scale1 = g_sq.reshape(-1) * lax.rsqrt(var1 + EPS)
    shift1 = beta_sq.reshape(-1) - mean1 * scale1

    # ---- kernel 1.5: apply squeeze BN + ReLU (bf16 in / bf16 out) ----
    sq_norm = pl.pallas_call(
        bn_relu_kernel,
        out_shape=jax.ShapeDtypeStruct((N, Cs, M_img_pad), jnp.bfloat16),
        grid=(N, G_img),
        in_specs=[pl.BlockSpec((1, Cs, MT), lambda n, g: (n, 0, g)),
                  pl.BlockSpec((Cs, 1), lambda n, g: (0, 0)),
                  pl.BlockSpec((Cs, 1), lambda n, g: (0, 0))],
        out_specs=pl.BlockSpec((1, Cs, MT), lambda n, g: (n, 0, g)),
        compiler_params=_cp(2),
    )(y_sq, scale1.reshape(Cs, 1), shift1.reshape(Cs, 1))

    # ---- padded-grid geometry for the expand stage (128-aligned lanes) ----
    Dp, Hp, Wp = D + 2, H + 2, W + 2
    Mq = D * Hp * Wp                       # expand output columns per image
    Q = max(1, _cdiv(_round_up(Mq, 128), 2048))
    MQT = _round_up(_cdiv(Mq, Q), 128)     # finalize lane tile (mult. of 128)
    Mq_pad = MQT * Q
    max_off = 2 * Hp * Wp + 2 * Wp + 2
    P = Dp * Hp * Wp
    P_ext = _round_up(max_off + Mq_pad, 128)

    # layout glue: spatially pad the squeeze activations per image (bf16 slab)
    sq5 = sq_norm[:, :, :M_img].reshape(N, Cs, D, H, W)
    sq_pad = jnp.pad(sq5, ((0, 0), (0, 0), (1, 1), (1, 1), (1, 1)))
    sq_pad = sq_pad.reshape(N, Cs, P)
    sq_pad = jnp.pad(sq_pad, ((0, 0), (0, 0), (0, P_ext - P)))

    # validity mask over the padded (d, hp, wp) output grid (stats only)
    q = jnp.arange(Mq_pad)
    r = q % (Hp * Wp)
    mask = ((q < Mq) & (r // Wp < H) & (r % Wp < W)).astype(jnp.float32)[None, :]

    # combined per-tap weights, expand1x1 folded into the centre tap (t=13),
    # flattened to [Ce, 27*Cs] to match the stacked-columns contraction axis
    offsets = tuple(kd * Hp * Wp + kh * Wp + kw
                    for kd in range(3) for kh in range(3) for kw in range(3))
    w_all = jnp.zeros((27, Ce, Cs), jnp.float32)
    w_all = w_all.at[:, Ce1:, :].set(
        jnp.transpose(w_e3, (0, 1, 2, 4, 3)).reshape(27, Ce3, Cs))
    w_all = w_all.at[13, :Ce1, :].set(w_e1.T)
    w_flat = jnp.transpose(w_all, (1, 0, 2)).reshape(Ce, 27 * Cs)

    # ---- kernel 2: expand convs (single K=27*Cs matmul) + BN partials ----
    E, t1, t2 = pl.pallas_call(
        make_expand_kernel(offsets, Mq_pad),
        out_shape=(jax.ShapeDtypeStruct((N, Ce, Mq_pad), jnp.bfloat16),
                   jax.ShapeDtypeStruct((N, Ce, 1), jnp.float32),
                   jax.ShapeDtypeStruct((N, Ce, 1), jnp.float32)),
        grid=(N,),
        in_specs=[pl.BlockSpec((1, Cs, P_ext), lambda n: (n, 0, 0)),
                  pl.BlockSpec((Ce, 27 * Cs), lambda n: (0, 0)),
                  pl.BlockSpec((1, Mq_pad), lambda n: (0, 0))],
        out_specs=(pl.BlockSpec((1, Ce, Mq_pad), lambda n: (n, 0, 0)),
                   pl.BlockSpec((1, Ce, 1), lambda n: (n, 0, 0)),
                   pl.BlockSpec((1, Ce, 1), lambda n: (n, 0, 0))),
        compiler_params=_cp(1),
    )(sq_pad, w_flat, mask)

    # finalize expand BN (two BatchNorm3d's == per-channel concat)
    sumE1 = jnp.sum(t1, axis=0)[:, 0]
    sumE2 = jnp.sum(t2, axis=0)[:, 0]
    mean2 = sumE1 / M
    var2 = jnp.maximum(sumE2 / M - mean2 * mean2, 0.0)
    gamma2 = jnp.concatenate([g_e1.reshape(-1), g_e3.reshape(-1)])
    beta2 = jnp.concatenate([beta_e1.reshape(-1), beta_e3.reshape(-1)])
    scale2 = gamma2 * lax.rsqrt(var2 + EPS)
    shift2 = beta2 - mean2 * scale2

    # ---- kernel 3: expand BN affine (+ bypass) + ReLU on padded grid ----
    in_arrays = [E, scale2.reshape(Ce, 1), shift2.reshape(Ce, 1)]
    in_specs = [pl.BlockSpec((1, Ce, MQT), lambda n, qi: (n, 0, qi)),
                pl.BlockSpec((Ce, 1), lambda n, qi: (0, 0)),
                pl.BlockSpec((Ce, 1), lambda n, qi: (0, 0))]
    if use_bypass:
        # x laid out on the same padded (d, hp, wp) grid (garbage cols cropped)
        xg = jnp.pad(x, ((0, 0), (0, 0), (0, 0), (0, Hp - H), (0, Wp - W)))
        xg = xg.reshape(N, Cin, Mq)
        xg = jnp.pad(xg, ((0, 0), (0, 0), (0, Mq_pad - Mq)))
        in_arrays.append(xg)
        in_specs.append(pl.BlockSpec((1, Cin, MQT), lambda n, qi: (n, 0, qi)))

    out_pg = pl.pallas_call(
        make_finalize_kernel(use_bypass),
        out_shape=jax.ShapeDtypeStruct((N, Ce, Mq_pad), jnp.float32),
        grid=(N, Q),
        in_specs=in_specs,
        out_specs=pl.BlockSpec((1, Ce, MQT), lambda n, qi: (n, 0, qi)),
        compiler_params=_cp(2),
    )(*in_arrays)

    # single crop back to NCDHW (no transpose needed: layout is already NC...)
    out = out_pg[:, :, :Mq].reshape(N, Ce, D, Hp, Wp)[:, :, :, :H, :W]
    return out


# ----------------------------- reference --------------------------------


def fire_reference(x, params, use_bypass=False):
    """Pure-JAX f32 reference matching the PyTorch module (train-mode BN)."""
    xl = jnp.transpose(x, (0, 2, 3, 4, 1)).astype(jnp.float32)  # NDHWC

    def bn(y, g, b):
        m = jnp.mean(y, axis=(0, 1, 2, 3), keepdims=True)
        v = jnp.mean((y - m) ** 2, axis=(0, 1, 2, 3), keepdims=True)
        return (y - m) * lax.rsqrt(v + EPS) * g.reshape(1, 1, 1, 1, -1) \
            + b.reshape(1, 1, 1, 1, -1)

    w_sq, b_sq, g_sq, beta_sq = params["squeeze"]
    w_e1, b_e1, g_e1, beta_e1 = params["expand1x1"]
    w_e3, b_e3, g_e3, beta_e3 = params["expand3x3"]

    sq = jnp.einsum("ndhwc,co->ndhwo", xl, w_sq,
                    precision="highest") + b_sq.reshape(1, 1, 1, 1, -1)
    sq = jnp.maximum(bn(sq, g_sq, beta_sq), 0.0)

    e1 = jnp.einsum("ndhwc,co->ndhwo", sq, w_e1,
                    precision="highest") + b_e1.reshape(1, 1, 1, 1, -1)
    e1 = bn(e1, g_e1, beta_e1)

    e3 = lax.conv_general_dilated(
        sq, w_e3, window_strides=(1, 1, 1), padding="SAME",
        dimension_numbers=("NDHWC", "DHWIO", "NDHWC"),
        precision=lax.Precision.HIGHEST) + b_e3.reshape(1, 1, 1, 1, -1)
    e3 = bn(e3, g_e3, beta_e3)

    out = jnp.concatenate([e1, e3], axis=-1)
    if use_bypass:
        out = out + xl
    out = jnp.maximum(out, 0.0)
    return jnp.transpose(out, (0, 4, 1, 2, 3))


# ----------------------------- params -----------------------------------


def init_params(key, inplanes, squeeze_planes, e1_planes, e3_planes):
    ks = jax.random.split(key, 12)

    def uni(k, shape, fan_in):
        bound = 1.0 / (fan_in ** 0.5)
        return jax.random.uniform(k, shape, jnp.float32, -bound, bound)

    params = {
        "squeeze": (
            uni(ks[0], (inplanes, squeeze_planes), inplanes),           # [Cin,Cs]
            uni(ks[1], (1, squeeze_planes), inplanes),                  # conv bias
            1.0 + 0.1 * jax.random.normal(ks[2], (1, squeeze_planes)),  # BN gamma
            0.1 * jax.random.normal(ks[3], (1, squeeze_planes)),        # BN beta
        ),
        "expand1x1": (
            uni(ks[4], (squeeze_planes, e1_planes), squeeze_planes),
            uni(ks[5], (1, e1_planes), squeeze_planes),
            1.0 + 0.1 * jax.random.normal(ks[6], (1, e1_planes)),
            0.1 * jax.random.normal(ks[7], (1, e1_planes)),
        ),
        "expand3x3": (
            uni(ks[8], (3, 3, 3, squeeze_planes, e3_planes), 27 * squeeze_planes),
            uni(ks[9], (1, e3_planes), 27 * squeeze_planes),
            1.0 + 0.1 * jax.random.normal(ks[10], (1, e3_planes)),
            0.1 * jax.random.normal(ks[11], (1, e3_planes)),
        ),
    }
    return jax.tree_util.tree_map(lambda a: a.astype(jnp.float32), params)


# ------------------------------ main -------------------------------------


if __name__ == "__main__":
    key = jax.random.PRNGKey(0)
    kx, kp = jax.random.split(key)

    # Fire(inplanes=16, squeeze=8, expand1x1=8, expand3x3=8, use_bypass=True)
    N, Cin, D, H, W = 2, 16, 4, 8, 8
    Cs, Ce1, Ce3 = 8, 8, 8
    use_bypass = True

    x = jax.random.normal(kx, (N, Cin, D, H, W), jnp.float32)
    params = init_params(kp, Cin, Cs, Ce1, Ce3)

    fire_jit = jax.jit(fire_forward, static_argnames=("use_bypass",))
    out = jax.block_until_ready(fire_jit(x, params, use_bypass=use_bypass))

    assert out.shape == (N, Ce1 + Ce3, D, H, W), out.shape

    ref = fire_reference(x, params, use_bypass=use_bypass)
    if not jnp.allclose(out, ref, rtol=2e-2, atol=2e-2):
        max_err = float(jnp.max(jnp.abs(out - ref)))
        raise AssertionError(f"kernel/reference mismatch, max abs err = {max_err}")

    print("KERNEL_OK")
</pallas_src>

<mosaic_0001>
module attributes {stable_mosaic.version = 11 : i64} {
  func.func @bn_relu_kernel(%arg0: i32, %arg1: i32, %arg2: memref<1x8x256xbf16, #tpu.memory_space<vmem>>, %arg3: memref<8x1xf32, #tpu.memory_space<vmem>>, %arg4: memref<8x1xf32, #tpu.memory_space<vmem>>, %arg5: memref<1x8x256xbf16, #tpu.memory_space<vmem>>) attributes {dimension_semantics = [#tpu.dimension_semantics<parallel>, #tpu.dimension_semantics<parallel>], iteration_bounds = array<i64: 2, 1>, scalar_prefetch = 0 : i64, scratch_operands = 0 : i64, tpu.core_type = #tpu.core_type<tc>, window_params = [{transform_indices = @transform_0, window_bounds = array<i64: 1, 8, 256>}, {pipeline_mode = #tpu.pipeline_mode<synchronous>, transform_indices = @transform_1, window_bounds = array<i64: 8, 1>}, {pipeline_mode = #tpu.pipeline_mode<synchronous>, transform_indices = @transform_2, window_bounds = array<i64: 8, 1>}, {transform_indices = @transform_3, window_bounds = array<i64: 1, 8, 256>}]} {
    %c0 = arith.constant 0 : index
    %c0_0 = arith.constant 0 : index
    %c0_1 = arith.constant 0 : index
    %0 = vector.load %arg2[%c0, %c0_0, %c0_1] : memref<1x8x256xbf16, #tpu.memory_space<vmem>>, vector<1x8x256xbf16>
    %1 = vector.shape_cast %0 : vector<1x8x256xbf16> to vector<8x256xbf16>
    %2 = arith.extf %1 : vector<8x256xbf16> to vector<8x256xf32>
    %c0_2 = arith.constant 0 : index
    %c0_3 = arith.constant 0 : index
    %3 = vector.load %arg3[%c0_2, %c0_3] : memref<8x1xf32, #tpu.memory_space<vmem>>, vector<8x1xf32>
    %4 = vector.broadcast %3 : vector<8x1xf32> to vector<8x256xf32>
    %5 = arith.mulf %2, %4 : vector<8x256xf32>
    %c0_4 = arith.constant 0 : index
    %c0_5 = arith.constant 0 : index
    %6 = vector.load %arg4[%c0_4, %c0_5] : memref<8x1xf32, #tpu.memory_space<vmem>>, vector<8x1xf32>
    %7 = vector.broadcast %6 : vector<8x1xf32> to vector<8x256xf32>
    %8 = arith.addf %5, %7 : vector<8x256xf32>
    %cst = arith.constant 0.000000e+00 : f32
    %9 = vector.broadcast %cst : f32 to vector<8x256xf32>
    %10 = arith.maximumf %8, %9 : vector<8x256xf32>
    %11 = arith.truncf %10 : vector<8x256xf32> to vector<8x256xbf16>
    %12 = vector.shape_cast %11 : vector<8x256xbf16> to vector<1x8x256xbf16>
    %c0_6 = arith.constant 0 : index
    %c0_7 = arith.constant 0 : index
    %c0_8 = arith.constant 0 : index
    %13 = vector.load %arg5[%c0_6, %c0_7, %c0_8] : memref<1x8x256xbf16, #tpu.memory_space<vmem>>, vector<1x8x256xbf16>
    tpu.vector_store %arg5[%c0_6, %c0_7, %c0_8], %12 {strides = array<i32>} : memref<1x8x256xbf16, #tpu.memory_space<vmem>>, vector<1x8x256xbf16>,
    return
  }
  func.func @transform_0(%arg0: i32, %arg1: i32) -> (i32, i32, i32) {
    %c0_i32 = arith.constant 0 : i32
    %c0_i32_0 = arith.constant 0 : i32
    return %arg0, %c0_i32, %arg1 : i32, i32, i32
  }
  func.func @transform_1(%arg0: i32, %arg1: i32) -> (i32, i32) {
    %c0_i32 = arith.constant 0 : i32
    %c0_i32_0 = arith.constant 0 : i32
    %c0_i32_1 = arith.constant 0 : i32
    return %c0_i32, %c0_i32_0 : i32, i32
  }
  func.func @transform_2(%arg0: i32, %arg1: i32) -> (i32, i32) {
    %c0_i32 = arith.constant 0 : i32
    %c0_i32_0 = arith.constant 0 : i32
    %c0_i32_1 = arith.constant 0 : i32
    return %c0_i32, %c0_i32_0 : i32, i32
  }
  func.func @transform_3(%arg0: i32, %arg1: i32) -> (i32, i32, i32) {
    %c0_i32 = arith.constant 0 : i32
    %c0_i32_0 = arith.constant 0 : i32
    return %arg0, %c0_i32, %arg1 : i32, i32, i32
  }
}

module attributes {stable_mosaic.version = 11 : i64} {
  func.func @squeeze_kernel(%arg0: i32, %arg1: i32, %arg2: memref<8x16xf32, #tpu.memory_space<vmem>>, %arg3: memref<1x16x256xf32, #tpu.memory_space<vmem>>, %arg4: memref<1x8x256xbf16, #tpu.memory_space<vmem>>, %arg5: memref<1x1x8x1xf32, #tpu.memory_space<vmem>>, %arg6: memref<1x1x8x1xf32, #tpu.memory_space<vmem>>) attributes {dimension_semantics = [#tpu.dimension_semantics<parallel>, #tpu.dimension_semantics<parallel>], iteration_bounds = array<i64: 2, 1>, scalar_prefetch = 0 : i64, scratch_operands = 0 : i64, tpu.core_type = #tpu.core_type<tc>, window_params = [{pipeline_mode = #tpu.pipeline_mode<synchronous>, transform_indices = @transform_0, window_bounds = array<i64: 8, 16>}, {transform_indices = @transform_1, window_bounds = array<i64: 1, 16, 256>}, {transform_indices = @transform_2, window_bounds = array<i64: 1, 8, 256>}, {transform_indices = @transform_3, window_bounds = array<i64: 1, 1, 8, 1>}, {transform_indices = @transform_4, window_bounds = array<i64: 1, 1, 8, 1>}]} {
    %c0 = arith.constant 0 : index
    %c0_0 = arith.constant 0 : index
    %0 = vector.load %arg2[%c0, %c0_0] : memref<8x16xf32, #tpu.memory_space<vmem>>, vector<8x16xf32>
    %c0_1 = arith.constant 0 : index
    %c0_2 = arith.constant 0 : index
    %c0_3 = arith.constant 0 : index
    %1 = vector.load %arg3[%c0_1, %c0_2, %c0_3] : memref<1x16x256xf32, #tpu.memory_space<vmem>>, vector<1x16x256xf32>
    %2 = vector.shape_cast %1 : vector<1x16x256xf32> to vector<16x256xf32>
    %cst = arith.constant dense<0.000000e+00> : vector<8x256xf32>
    %3 = tpu.matmul %0, %2, %cst {dimension_numbers = #tpu.dot_dimension_numbers<[1], [0], [0], [1], [0, 0, 1, 1], [], []>} : vector<8x16xf32>, vector<16x256xf32>, vector<8x256xf32> -> vector<8x256xf32>
    %4 = arith.truncf %3 : vector<8x256xf32> to vector<8x256xbf16>
    %5 = vector.shape_cast %4 : vector<8x256xbf16> to vector<1x8x256xbf16>
    %c0_4 = arith.constant 0 : index
    %c0_5 = arith.constant 0 : index
    %c0_6 = arith.constant 0 : index
    %6 = vector.load %arg4[%c0_4, %c0_5, %c0_6] : memref<1x8x256xbf16, #tpu.memory_space<vmem>>, vector<1x8x256xbf16>
    tpu.vector_store %arg4[%c0_4, %c0_5, %c0_6], %5 {strides = array<i32>} : memref<1x8x256xbf16, #tpu.memory_space<vmem>>, vector<1x8x256xbf16>,
    %cst_7 = arith.constant dense<0.000000e+00> : vector<8xf32>
    %7 = vector.multi_reduction <add>, %3, %cst_7 [1] : vector<8x256xf32> to vector<8xf32>
    %8 = vector.shape_cast %7 : vector<8xf32> to vector<8x1xf32>
    %9 = vector.shape_cast %8 : vector<8x1xf32> to vector<1x1x8x1xf32>
    %c0_8 = arith.constant 0 : index
    %c0_9 = arith.constant 0 : index
    %c0_10 = arith.constant 0 : index
    %c0_11 = arith.constant 0 : index
    %10 = vector.load %arg5[%c0_8, %c0_9, %c0_10, %c0_11] : memref<1x1x8x1xf32, #tpu.memory_space<vmem>>, vector<1x1x8x1xf32>
    tpu.vector_store %arg5[%c0_8, %c0_9, %c0_10, %c0_11], %9 {strides = array<i32>} : memref<1x1x8x1xf32, #tpu.memory_space<vmem>>, vector<1x1x8x1xf32>,
    %11 = arith.mulf %3, %3 : vector<8x256xf32>
    %cst_12 = arith.constant dense<0.000000e+00> : vector<8xf32>
    %12 = vector.multi_reduction <add>, %11, %cst_12 [1] : vector<8x256xf32> to vector<8xf32>
    %13 = vector.shape_cast %12 : vector<8xf32> to vector<8x1xf32>
    %14 = vector.shape_cast %13 : vector<8x1xf32> to vector<1x1x8x1xf32>
    %c0_13 = arith.constant 0 : index
    %c0_14 = arith.constant 0 : index
    %c0_15 = arith.constant 0 : index
    %c0_16 = arith.constant 0 : index
    %15 = vector.load %arg6[%c0_13, %c0_14, %c0_15, %c0_16] : memref<1x1x8x1xf32, #tpu.memory_space<vmem>>, vector<1x1x8x1xf32>
    tpu.vector_store %arg6[%c0_13, %c0_14, %c0_15, %c0_16], %14 {strides = array<i32>} : memref<1x1x8x1xf32, #tpu.memory_space<vmem>>, vector<1x1x8x1xf32>,
    return
  }
  func.func @transform_0(%arg0: i32, %arg1: i32) -> (i32, i32) {
    %c0_i32 = arith.constant 0 : i32
    %c0_i32_0 = arith.constant 0 : i32
    %c0_i32_1 = arith.constant 0 : i32
    return %c0_i32, %c0_i32_0 : i32, i32
  }
  func.func @transform_1(%arg0: i32, %arg1: i32) -> (i32, i32, i32) {
    %c0_i32 = arith.constant 0 : i32
    %c0_i32_0 = arith.constant 0 : i32
    return %arg0, %c0_i32, %arg1 : i32, i32, i32
  }
  func.func @transform_2(%arg0: i32, %arg1: i32) -> (i32, i32, i32) {
    %c0_i32 = arith.constant 0 : i32
    %c0_i32_0 = arith.constant 0 : i32
    return %arg0, %c0_i32, %arg1 : i32, i32, i32
  }
  func.func @transform_3(%arg0: i32, %arg1: i32) -> (i32, i32, i32, i32) {
    %c0_i32 = arith.constant 0 : i32
    %c0_i32_0 = arith.constant 0 : i32
    %c0_i32_1 = arith.constant 0 : i32
    return %arg0, %arg1, %c0_i32, %c0_i32_0 : i32, i32, i32, i32
  }
  func.func @transform_4(%arg0: i32, %arg1: i32) -> (i32, i32, i32, i32) {
    %c0_i32 = arith.constant 0 : i32
    %c0_i32_0 = arith.constant 0 : i32
    %c0_i32_1 = arith.constant 0 : i32
    return %arg0, %arg1, %c0_i32, %c0_i32_0 : i32, i32, i32, i32
  }
}

module attributes {stable_mosaic.version = 11 : i64} {
  func.func @expand_kernel(%arg0: i32, %arg1: memref<1x8x768xbf16, #tpu.memory_space<vmem>>, %arg2: memref<16x216xf32, #tpu.memory_space<vmem>>, %arg3: memref<1x512xf32, #tpu.memory_space<vmem>>, %arg4: memref<1x16x512xbf16, #tpu.memory_space<vmem>>, %arg5: memref<1x16x1xf32, #tpu.memory_space<vmem>>, %arg6: memref<1x16x1xf32, #tpu.memory_space<vmem>>) attributes {dimension_semantics = [#tpu.dimension_semantics<parallel>], iteration_bounds = array<i64: 2>, scalar_prefetch = 0 : i64, scratch_operands = 0 : i64, tpu.core_type = #tpu.core_type<tc>, window_params = [{transform_indices = @transform_0, window_bounds = array<i64: 1, 8, 768>}, {pipeline_mode = #tpu.pipeline_mode<synchronous>, transform_indices = @transform_1, window_bounds = array<i64: 16, 216>}, {pipeline_mode = #tpu.pipeline_mode<synchronous>, transform_indices = @transform_2, window_bounds = array<i64: 1, 512>}, {transform_indices = @transform_3, window_bounds = array<i64: 1, 16, 512>}, {transform_indices = @transform_4, window_bounds = array<i64: 1, 16, 1>}, {transform_indices = @transform_5, window_bounds = array<i64: 1, 16, 1>}]} {
    %c0 = arith.constant 0 : index
    %c0_0 = arith.constant 0 : index
    %c0_1 = arith.constant 0 : index
    %0 = vector.load %arg1[%c0, %c0_0, %c0_1] : memref<1x8x768xbf16, #tpu.memory_space<vmem>>, vector<1x8x768xbf16>
    %1 = vector.shape_cast %0 : vector<1x8x768xbf16> to vector<8x768xbf16>
    %2 = arith.extf %1 : vector<8x768xbf16> to vector<8x768xf32>
    %3 = vector.extract_strided_slice %2 {offsets = [0, 0], sizes = [8, 512], strides = [1, 1]} : vector<8x768xf32> to vector<8x512xf32>
    %4 = vector.extract_strided_slice %2 {offsets = [0, 1], sizes = [8, 512], strides = [1, 1]} : vector<8x768xf32> to vector<8x512xf32>
    %5 = vector.extract_strided_slice %2 {offsets = [0, 2], sizes = [8, 512], strides = [1, 1]} : vector<8x768xf32> to vector<8x512xf32>
    %6 = vector.extract_strided_slice %2 {offsets = [0, 10], sizes = [8, 512], strides = [1, 1]} : vector<8x768xf32> to vector<8x512xf32>
    %7 = vector.extract_strided_slice %2 {offsets = [0, 11], sizes = [8, 512], strides = [1, 1]} : vector<8x768xf32> to vector<8x512xf32>
    %8 = vector.extract_strided_slice %2 {offsets = [0, 12], sizes = [8, 512], strides = [1, 1]} : vector<8x768xf32> to vector<8x512xf32>
    %9 = vector.extract_strided_slice %2 {offsets = [0, 20], sizes = [8, 512], strides = [1, 1]} : vector<8x768xf32> to vector<8x512xf32>
    %10 = vector.extract_strided_slice %2 {offsets = [0, 21], sizes = [8, 512], strides = [1, 1]} : vector<8x768xf32> to vector<8x512xf32>
    %11 = vector.extract_strided_slice %2 {offsets = [0, 22], sizes = [8, 512], strides = [1, 1]} : vector<8x768xf32> to vector<8x512xf32>
    %12 = vector.extract_strided_slice %2 {offsets = [0, 100], sizes = [8, 512], strides = [1, 1]} : vector<8x768xf32> to vector<8x512xf32>
    %13 = vector.extract_strided_slice %2 {offsets = [0, 101], sizes = [8, 512], strides = [1, 1]} : vector<8x768xf32> to vector<8x512xf32>
    %14 = vector.extract_strided_slice %2 {offsets = [0, 102], sizes = [8, 512], strides = [1, 1]} : vector<8x768xf32> to vector<8x512xf32>
    %15 = vector.extract_strided_slice %2 {offsets = [0, 110], sizes = [8, 512], strides = [1, 1]} : vector<8x768xf32> to vector<8x512xf32>
    %16 = vector.extract_strided_slice %2 {offsets = [0, 111], sizes = [8, 512], strides = [1, 1]} : vector<8x768xf32> to vector<8x512xf32>
    %17 = vector.extract_strided_slice %2 {offsets = [0, 112], sizes = [8, 512], strides = [1, 1]} : vector<8x768xf32> to vector<8x512xf32>
    %18 = vector.extract_strided_slice %2 {offsets = [0, 120], sizes = [8, 512], strides = [1, 1]} : vector<8x768xf32> to vector<8x512xf32>
    %19 = vector.extract_strided_slice %2 {offsets = [0, 121], sizes = [8, 512], strides = [1, 1]} : vector<8x768xf32> to vector<8x512xf32>
    %20 = vector.extract_strided_slice %2 {offsets = [0, 122], sizes = [8, 512], strides = [1, 1]} : vector<8x768xf32> to vector<8x512xf32>
    %21 = vector.extract_strided_slice %2 {offsets = [0, 200], sizes = [8, 512], strides = [1, 1]} : vector<8x768xf32> to vector<8x512xf32>
    %22 = vector.extract_strided_slice %2 {offsets = [0, 201], sizes = [8, 512], strides = [1, 1]} : vector<8x768xf32> to vector<8x512xf32>
    %23 = vector.extract_strided_slice %2 {offsets = [0, 202], sizes = [8, 512], strides = [1, 1]} : vector<8x768xf32> to vector<8x512xf32>
    %24 = vector.extract_strided_slice %2 {offsets = [0, 210], sizes = [8, 512], strides = [1, 1]} : vector<8x768xf32> to vector<8x512xf32>
    %25 = vector.extract_strided_slice %2 {offsets = [0, 211], sizes = [8, 512], strides = [1, 1]} : vector<8x768xf32> to vector<8x512xf32>
    %26 = vector.extract_strided_slice %2 {offsets = [0, 212], sizes = [8, 512], strides = [1, 1]} : vector<8x768xf32> to vector<8x512xf32>
    %27 = vector.extract_strided_slice %2 {offsets = [0, 220], sizes = [8, 512], strides = [1, 1]} : vector<8x768xf32> to vector<8x512xf32>
    %28 = vector.extract_strided_slice %2 {offsets = [0, 221], sizes = [8, 512], strides = [1, 1]} : vector<8x768xf32> to vector<8x512xf32>
    %29 = vector.extract_strided_slice %2 {offsets = [0, 222], sizes = [8, 512], strides = [1, 1]} : vector<8x768xf32> to vector<8x512xf32>
    %30 = tpu.concatenate %3, %4, %5, %6, %7, %8, %9, %10, %11, %12, %13, %14, %15, %16, %17, %18 in 0 : vector<8x512xf32>, vector<8x512xf32>, vector<8x512xf32>, vector<8x512xf32>, vector<8x512xf32>, vector<8x512xf32>, vector<8x512xf32>, vector<8x512xf32>, vector<8x512xf32>, vector<8x512xf32>, vector<8x512xf32>, vector<8x512xf32>, vector<8x512xf32>, vector<8x512xf32>, vector<8x512xf32>, vector<8x512xf32> -> vector<128x512xf32>
    %31 = tpu.concatenate %19, %20, %21, %22, %23, %24, %25, %26, %27, %28, %29 in 0 : vector<8x512xf32>, vector<8x512xf32>, vector<8x512xf32>, vector<8x512xf32>, vector<8x512xf32>, vector<8x512xf32>, vector<8x512xf32>, vector<8x512xf32>, vector<8x512xf32>, vector<8x512xf32>, vector<8x512xf32> -> vector<88x512xf32>
    %32 = tpu.concatenate %30, %31 in 0 : vector<128x512xf32>, vector<88x512xf32> -> vector<216x512xf32>
    %c0_2 = arith.constant 0 : index
    %c0_3 = arith.constant 0 : index
    %33 = vector.load %arg2[%c0_2, %c0_3] : memref<16x216xf32, #tpu.memory_space<vmem>>, vector<16x216xf32>
    %cst = arith.constant dense<0.000000e+00> : vector<16x512xf32>
    %34 = tpu.matmul %33, %32, %cst {dimension_numbers = #tpu.dot_dimension_numbers<[1], [0], [0], [1], [0, 0, 1, 1], [], []>} : vector<16x216xf32>, vector<216x512xf32>, vector<16x512xf32> -> vector<16x512xf32>
    %35 = arith.truncf %34 : vector<16x512xf32> to vector<16x512xbf16>
    %36 = vector.shape_cast %35 : vector<16x512xbf16> to vector<1x16x512xbf16>
    %c0_4 = arith.constant 0 : index
    %c0_5 = arith.constant 0 : index
    %c0_6 = arith.constant 0 : index
    %37 = vector.load %arg4[%c0_4, %c0_5, %c0_6] : memref<1x16x512xbf16, #tpu.memory_space<vmem>>, vector<1x16x512xbf16>
    tpu.vector_store %arg4[%c0_4, %c0_5, %c0_6], %36 {strides = array<i32>} : memref<1x16x512xbf16, #tpu.memory_space<vmem>>, vector<1x16x512xbf16>,
    %c0_7 = arith.constant 0 : index
    %c0_8 = arith.constant 0 : index
    %38 = vector.load %arg3[%c0_7, %c0_8] : memref<1x512xf32, #tpu.memory_space<vmem>>, vector<1x512xf32>
    %39 = vector.broadcast %38 : vector<1x512xf32> to vector<16x512xf32>
    %40 = arith.mulf %34, %39 : vector<16x512xf32>
    %cst_9 = arith.constant dense<0.000000e+00> : vector<16xf32>
    %41 = vector.multi_reduction <add>, %40, %cst_9 [1] : vector<16x512xf32> to vector<16xf32>
    %42 = vector.shape_cast %41 : vector<16xf32> to vector<16x1xf32>
    %43 = vector.shape_cast %42 : vector<16x1xf32> to vector<1x16x1xf32>
    %c0_10 = arith.constant 0 : index
    %c0_11 = arith.constant 0 : index
    %c0_12 = arith.constant 0 : index
    %44 = vector.load %arg5[%c0_10, %c0_11, %c0_12] : memref<1x16x1xf32, #tpu.memory_space<vmem>>, vector<1x16x1xf32>
    tpu.vector_store %arg5[%c0_10, %c0_11, %c0_12], %43 {strides = array<i32>} : memref<1x16x1xf32, #tpu.memory_space<vmem>>, vector<1x16x1xf32>,
    %45 = arith.mulf %34, %34 : vector<16x512xf32>
    %46 = vector.broadcast %38 : vector<1x512xf32> to vector<16x512xf32>
    %47 = arith.mulf %45, %46 : vector<16x512xf32>
    %cst_13 = arith.constant dense<0.000000e+00> : vector<16xf32>
    %48 = vector.multi_reduction <add>, %47, %cst_13 [1] : vector<16x512xf32> to vector<16xf32>
    %49 = vector.shape_cast %48 : vector<16xf32> to vector<16x1xf32>
    %50 = vector.shape_cast %49 : vector<16x1xf32> to vector<1x16x1xf32>
    %c0_14 = arith.constant 0 : index
    %c0_15 = arith.constant 0 : index
    %c0_16 = arith.constant 0 : index
    %51 = vector.load %arg6[%c0_14, %c0_15, %c0_16] : memref<1x16x1xf32, #tpu.memory_space<vmem>>, vector<1x16x1xf32>
    tpu.vector_store %arg6[%c0_14, %c0_15, %c0_16], %50 {strides = array<i32>} : memref<1x16x1xf32, #tpu.memory_space<vmem>>, vector<1x16x1xf32>,
    return
  }
  func.func @transform_0(%arg0: i32) -> (i32, i32, i32) {
    %c0_i32 = arith.constant 0 : i32
    %c0_i32_0 = arith.constant 0 : i32
    %c0_i32_1 = arith.constant 0 : i32
    return %arg0, %c0_i32, %c0_i32_0 : i32, i32, i32
  }
  func.func @transform_1(%arg0: i32) -> (i32, i32) {
    %c0_i32 = arith.constant 0 : i32
    %c0_i32_0 = arith.constant 0 : i32
    %c0_i32_1 = arith.constant 0 : i32
    return %c0_i32, %c0_i32_0 : i32, i32
  }
  func.func @transform_2(%arg0: i32) -> (i32, i32) {
    %c0_i32 = arith.constant 0 : i32
    %c0_i32_0 = arith.constant 0 : i32
    %c0_i32_1 = arith.constant 0 : i32
    return %c0_i32, %c0_i32_0 : i32, i32
  }
  func.func @transform_3(%arg0: i32) -> (i32, i32, i32) {
    %c0_i32 = arith.constant 0 : i32
    %c0_i32_0 = arith.constant 0 : i32
    %c0_i32_1 = arith.constant 0 : i32
    return %arg0, %c0_i32, %c0_i32_0 : i32, i32, i32
  }
  func.func @transform_4(%arg0: i32) -> (i32, i32, i32) {
    %c0_i32 = arith.constant 0 : i32
    %c0_i32_0 = arith.constant 0 : i32
    %c0_i32_1 = arith.constant 0 : i32
    return %arg0, %c0_i32, %c0_i32_0 : i32, i32, i32
  }
  func.func @transform_5(%arg0: i32) -> (i32, i32, i32) {
    %c0_i32 = arith.constant 0 : i32
    %c0_i32_0 = arith.constant 0 : i32
    %c0_i32_1 = arith.constant 0 : i32
    return %arg0, %c0_i32, %c0_i32_0 : i32, i32, i32
  }
}

module attributes {stable_mosaic.version = 11 : i64} {
  func.func @finalize_kernel(%arg0: i32, %arg1: i32, %arg2: memref<1x16x512xbf16, #tpu.memory_space<vmem>>, %arg3: memref<16x1xf32, #tpu.memory_space<vmem>>, %arg4: memref<16x1xf32, #tpu.memory_space<vmem>>, %arg5: memref<1x16x512xf32, #tpu.memory_space<vmem>>, %arg6: memref<1x16x512xf32, #tpu.memory_space<vmem>>) attributes {dimension_semantics = [#tpu.dimension_semantics<parallel>, #tpu.dimension_semantics<parallel>], iteration_bounds = array<i64: 2, 1>, scalar_prefetch = 0 : i64, scratch_operands = 0 : i64, tpu.core_type = #tpu.core_type<tc>, window_params = [{transform_indices = @transform_0, window_bounds = array<i64: 1, 16, 512>}, {pipeline_mode = #tpu.pipeline_mode<synchronous>, transform_indices = @transform_1, window_bounds = array<i64: 16, 1>}, {pipeline_mode = #tpu.pipeline_mode<synchronous>, transform_indices = @transform_2, window_bounds = array<i64: 16, 1>}, {transform_indices = @transform_3, window_bounds = array<i64: 1, 16, 512>}, {transform_indices = @transform_4, window_bounds = array<i64: 1, 16, 512>}]} {
    %c0 = arith.constant 0 : index
    %c0_0 = arith.constant 0 : index
    %c0_1 = arith.constant 0 : index
    %0 = vector.load %arg2[%c0, %c0_0, %c0_1] : memref<1x16x512xbf16, #tpu.memory_space<vmem>>, vector<1x16x512xbf16>
    %1 = vector.shape_cast %0 : vector<1x16x512xbf16> to vector<16x512xbf16>
    %2 = arith.extf %1 : vector<16x512xbf16> to vector<16x512xf32>
    %c0_2 = arith.constant 0 : index
    %c0_3 = arith.constant 0 : index
    %3 = vector.load %arg3[%c0_2, %c0_3] : memref<16x1xf32, #tpu.memory_space<vmem>>, vector<16x1xf32>
    %4 = vector.broadcast %3 : vector<16x1xf32> to vector<16x512xf32>
    %5 = arith.mulf %2, %4 : vector<16x512xf32>
    %c0_4 = arith.constant 0 : index
    %c0_5 = arith.constant 0 : index
    %6 = vector.load %arg4[%c0_4, %c0_5] : memref<16x1xf32, #tpu.memory_space<vmem>>, vector<16x1xf32>
    %7 = vector.broadcast %6 : vector<16x1xf32> to vector<16x512xf32>
    %8 = arith.addf %5, %7 : vector<16x512xf32>
    %c0_6 = arith.constant 0 : index
    %c0_7 = arith.constant 0 : index
    %c0_8 = arith.constant 0 : index
    %9 = vector.load %arg5[%c0_6, %c0_7, %c0_8] : memref<1x16x512xf32, #tpu.memory_space<vmem>>, vector<1x16x512xf32>
    %10 = vector.shape_cast %9 : vector<1x16x512xf32> to vector<16x512xf32>
    %11 = arith.addf %8, %10 : vector<16x512xf32>
    %cst = arith.constant 0.000000e+00 : f32
    %12 = vector.broadcast %cst : f32 to vector<16x512xf32>
    %13 = arith.maximumf %11, %12 : vector<16x512xf32>
    %14 = vector.shape_cast %13 : vector<16x512xf32> to vector<1x16x512xf32>
    %c0_9 = arith.constant 0 : index
    %c0_10 = arith.constant 0 : index
    %c0_11 = arith.constant 0 : index
    %15 = vector.load %arg6[%c0_9, %c0_10, %c0_11] : memref<1x16x512xf32, #tpu.memory_space<vmem>>, vector<1x16x512xf32>
    tpu.vector_store %arg6[%c0_9, %c0_10, %c0_11], %14 {strides = array<i32>} : memref<1x16x512xf32, #tpu.memory_space<vmem>>, vector<1x16x512xf32>,
    return
  }
  func.func @transform_0(%arg0: i32, %arg1: i32) -> (i32, i32, i32) {
    %c0_i32 = arith.constant 0 : i32
    %c0_i32_0 = arith.constant 0 : i32
    return %arg0, %c0_i32, %arg1 : i32, i32, i32
  }
  func.func @transform_1(%arg0: i32, %arg1: i32) -> (i32, i32) {
    %c0_i32 = arith.constant 0 : i32
    %c0_i32_0 = arith.constant 0 : i32
    %c0_i32_1 = arith.constant 0 : i32
    return %c0_i32, %c0_i32_0 : i32, i32
  }
  func.func @transform_2(%arg0: i32, %arg1: i32) -> (i32, i32) {
    %c0_i32 = arith.constant 0 : i32
    %c0_i32_0 = arith.constant 0 : i32
    %c0_i32_1 = arith.constant 0 : i32
    return %c0_i32, %c0_i32_0 : i32, i32
  }
  func.func @transform_3(%arg0: i32, %arg1: i32) -> (i32, i32, i32) {
    %c0_i32 = arith.constant 0 : i32
    %c0_i32_0 = arith.constant 0 : i32
    return %arg0, %c0_i32, %arg1 : i32, i32, i32
  }
  func.func @transform_4(%arg0: i32, %arg1: i32) -> (i32, i32, i32) {
    %c0_i32 = arith.constant 0 : i32
    %c0_i32_0 = arith.constant 0 : i32
    return %arg0, %c0_i32, %arg1 : i32, i32, i32
  }
}

</mosaic_0001>

<bundles_post_ra>
// kernel: fire_forward.5
= control target key start
LH: loop header
LB: loop body
LE: loop exit
PB: predicated region body
PF: predicated region fallthrough
CT: control target
= control target key end

     0   :  { %s413_s12 = smov 0   ;;  %s415_s13 = smov 0   ;;  %s452_s0 = inlined_call_operand.vmem [shape: bf16[2,8,256], index: 0, kind: input, shape index: {}]   ;;  %s453_s1 = inlined_call_operand.vmem [shape: f32[8,1], index: 1, kind: input, shape index: {}]   ;;  %s454_s2 = inlined_call_operand.vmem [shape: f32[8,1], index: 2, kind: input, shape index: {}]   ;;  %s455_s3 = inlined_call_operand.vmem [shape: bf16[2,8,256], index: 3, kind: output, shape index: {}]  }
   0x1   :  { %s417_s14 = smov 0  }
   0x2 LB: > { %s25_s15 = sadd.s32 1, %s386_s13  ;;  %p331_p0 = scmp.ge.s32.totalorder %s390_s14, 1  ;;  %s390_s14 = sphi %s417_s14, %s13_s14   ;;  %s386_s13 = sphi %s415_s13, %s457_s13   ;;  %s382_s12 = sphi %s413_s12, %s456_s12  }
   0x3   : > { %p27_p1 = scmp.ge.s32.totalorder %s25_s15, 2  ;;  %p158_p2 = scmp.lt.s32.totalorder %s390_s14, 3 }
   0x5   : > { %s459_s15 = smov (%p27_p1, %s25_s15), 0  ;;  %p159_p3 = pnand %p331_p0, %p158_p2 }
   0x6   : > { %v213_v0 = vld [vmem:[%s453_s1] sm:$0xff] (!%p159_p3)  ;;  %v392_v1 = vmov (!%p159_p3), 0   ;;  %p191_p4 = scmp.lt.s32.totalorder (!%p159_p3), %s382_s12, 1 }
   0x7   : > { %162 = sbr.rel (%p159_p3) target bundleno = 147 (0x93), region = 32  ;;  %367 = vset.pattern.permute.xlu0 (!%p159_p3), %v392_v1  ;;  %v221_v2 = vld [vmem:[%s454_s2] sm:$0xff] (!%p159_p3) }
   0x8   : > { %216 = vperm.xlu0 (!%p159_p3), %367, %v213_v0  }
   0xc   : > { %224 = vperm.xlu0 (!%p159_p3), %367, %v221_v2  }
   0xe   : > { %s461_s12 = smov (!%p191_p4, %s382_s12), 1 }
   0xf   : > { %s339_s20 = sshll.u32 %s461_s12, 3 }
  0x10   : > { %s198_s23 = scalar_lea.vmem %s452_s0, %s339_s20  ;;  %s208_s26 = scalar_lea.vmem %s455_s3, %s339_s20 }
  0x11   : > { %v210_v3 = vld [vmem:[%s198_s23] sm:$0xff] }
  0x12   : > { %v211_v4 = vunpack.c.l.bf16 %v210_v3  ;;  %v212_v5 = vunpack.c.h.bf16 %v210_v3 }
  0x87   : > { %v217_v6 = vpop.permute.xlu0 %216 }
  0x88   : > { %v219_v7 = vmul.f32 %v217_v6, %v211_v4  ;;  %v220_v8 = vmul.f32 %v217_v6, %v212_v5 }
  0x8b   : > { %v225_v9 = vpop.permute.xlu0 %224 }
  0x8c   : > { %v227_v10 = vadd.f32 %v225_v9, %v219_v7  ;;  %v228_v11 = vadd.f32 %v225_v9, %v220_v8 }
  0x8e   : > { %v229_v12 = vmax.f32 %v227_v10, 0.0  ;;  %v230_v13 = vmax.f32 %v228_v11, 0.0 }
  0x90   : > { %v341_v14 = vpack.c.bf16 %v230_v13, %v229_v12 }
  0x92   : > { %239 = vst [vmem:[%s208_s26] sm:$0xff] %v341_v14 }
  0x93 PF: > { %s13_s14 = sadd.s32 1, %s390_s14   ;;  %s456_s12 = smov %s386_s13 }
  0x94   : > { %p10_p5 = scmp.ge.s32.totalorder %s13_s14, 4   ;;  %s457_s13 = smov %s459_s15 }
  0x96   :  { %12 = sbr.rel (!%p10_p5) target bundleno = 2 (0x2), region = 62 }

// kernel: fire_forward.4
= control target key start
LH: loop header
LB: loop body
LE: loop exit
PB: predicated region body
PF: predicated region fallthrough
CT: control target
= control target key end

     0   :  { %s640_s15 = smov 0   ;;  %s642_s16 = smov 0   ;;  %s682_s0 = inlined_call_operand.vmem [shape: f32[8,16], index: 0, kind: input, shape index: {}]   ;;  %s683_s1 = inlined_call_operand.vmem [shape: f32[2,16,256], index: 1, kind: input, shape index: {}]   ;;  %s684_s2 = inlined_call_operand.vmem [shape: bf16[2,8,256], index: 2, kind: output, shape index: {0}]   ;;  %s685_s3 = inlined_call_operand.vmem [shape: f32[2,1,8,1], index: 3, kind: output, shape index: {1}]   ;;  %s686_s4 = inlined_call_operand.vmem [shape: f32[2,1,8,1], index: 4, kind: output, shape index: {2}]  }
   0x1   :  { %s644_s17 = smov 0  }
   0x2 LB: > { %s27_s18 = sadd.s32 1, %s608_s16  ;;  %p547_p0 = scmp.ge.s32.totalorder %s612_s17, 1  ;;  %s612_s17 = sphi %s644_s17, %s15_s17   ;;  %s608_s16 = sphi %s642_s16, %s688_s16   ;;  %s604_s15 = sphi %s640_s15, %s687_s15  }
   0x3   : > { %p29_p1 = scmp.ge.s32.totalorder %s27_s18, 2  ;;  %p192_p2 = scmp.lt.s32.totalorder %s612_s17, 3 }
   0x5   : > { %s690_s18 = smov (%p29_p1, %s27_s18), 0  ;;  %p193_p3 = pnand %p547_p0, %p192_p2 }
   0x6   : > { %p241_p4 = scmp.lt.s32.totalorder (!%p193_p3), %s604_s15, 1  ;;  %v614_v0 = vmov (!%p193_p3), 0.0   ;;  %v274_v7 = vld [vmem:[%s682_s0] sm:$0xff] (!%p193_p3)  ;;  %vm279_vm0 = vcmask (!%p193_p3), 130048   ;;  %vm366_vm1 = vcmask (!%p193_p3), 7168  }
   0x7   : > { %196 = sbr.rel (%p193_p3) target bundleno = 386 (0x182), region = 28  ;;  %347 = vmatprep.mubr.f32.mxu0 (!%p193_p3), %v614_v0 }
   0xe   : > { %s692_s15 = smov (!%p241_p4, %s604_s15), 1 }
   0xf   : > { %s558_s19 = sshll.u32 %s692_s15, 5  ;;  %s559_s25 = sshll.u32 %s692_s15, 3 }
  0x10   : > { %s248_s22 = scalar_lea.vmem %s683_s1, %s558_s19  ;;  %s258_s28 = scalar_lea.vmem %s684_s2, %s559_s25 }
  0x11   : > { %v276_v1 = vld [vmem:[%s248_s22 + $0x8] sm:$0xff]  ;;  %v278_v2 = vld [vmem:[%s248_s22 + $0x18] sm:$0xff]  ;;  %v275_v3 = vld [vmem:[%s248_s22] sm:$0xff]  ;;  %s266_s5 = scalar_lea.vmem %s685_s3, %s559_s25  ;;  %s273_s8 = scalar_lea.vmem %s686_s4, %s559_s25 }
  0x12   : > { %v561_v4 = vpack.c.bf16 %v278_v2, %v276_v1  ;;  %v277_v5 = vld [vmem:[%s248_s22 + $0x10] sm:$0xff] }
  0x13   : > { %v563_v6 = vpack.c.bf16 %v277_v5, %v275_v3 }
  0x14   : > { %562 = vmatprep.subr.bf16.mxu0 %v561_v4 }
  0x15   : > { %564 = vmatpush1.bf16.msra.mxu0 %v563_v6 }
  0x18   : > { %554 = vmatmul.mubr.msk.f32.vlgmr.msra.gmra.mrb[0].mxu0 %vm279_vm0, %v274_v7 }
  0xeb   : > { %v349_v8 = vpop.f32.mrb[0].mxu0 }
  0xec   : > { %v351_v9 = vpop.f32.mrb[1].mxu0  ;;  %v368_v10 = vmul.f32 %v349_v8, %v349_v8 }
  0xed   : > { %v560_v11 = vpack.c.bf16 %v351_v9, %v349_v8  ;;  %v369_v12 = vmul.f32 %v351_v9, %v351_v9  ;;  %v363_v13 = vadd.f32 %v351_v9, %v349_v8 }
  0xef   : > { %362 = vst [vmem:[%s258_s28] sm:$0xff] %v560_v11  ;;  %364 = vadd.xlane.f32.xlu0 %v363_v13  ;;  %v370_v14 = vadd.f32 %v369_v12, %v368_v10 }
  0xf3   : > { %371 = vadd.xlane.f32.xlu0 %v370_v14 }
 0x17c   : > { %v365_v15 = vpop.xlane.xlu0 %364 }
 0x17d   : > { %367 = vst.msk [vmem:[%s266_s5] sm:$0xff] %vm366_vm1, %v365_v15 }
 0x180   : > { %v372_v16 = vpop.xlane.xlu0 %371 }
 0x181   : > { %373 = vst.msk [vmem:[%s273_s8] sm:$0xff] %vm366_vm1, %v372_v16 }
 0x182 PF: > { %s15_s17 = sadd.s32 1, %s612_s17   ;;  %s687_s15 = smov %s608_s16 }
 0x183   : > { %p12_p5 = scmp.ge.s32.totalorder %s15_s17, 4   ;;  %s688_s16 = smov %s690_s18 }
 0x185   :  { %14 = sbr.rel (!%p12_p5) target bundleno = 2 (0x2), region = 82 }

// kernel: fire_forward.6
= control target key start
LH: loop header
LB: loop body
LE: loop exit
PB: predicated region body
PF: predicated region fallthrough
CT: control target
= control target key end

     0   :  { %s1836_s18 = smov 0   ;;  %s2213_s0 = inlined_call_operand.vmem [shape: bf16[2,8,768], index: 0, kind: input, shape index: {}]   ;;  %s2214_s1 = inlined_call_operand.vmem [shape: f32[16,216], index: 1, kind: input, shape index: {}]   ;;  %s2215_s2 = inlined_call_operand.vmem [shape: f32[1,512], index: 2, kind: input, shape index: {}]   ;;  %s2216_s3 = inlined_call_operand.vmem [shape: bf16[2,16,512], index: 3, kind: output, shape index: {0}]   ;;  %s2217_s4 = inlined_call_operand.vmem [shape: f32[2,16,1], index: 4, kind: output, shape index: {1}]   ;;  %s2218_s5 = inlined_call_operand.vmem [shape: f32[2,16,1], index: 5, kind: output, shape index: {2}]  }
   0x1 LB: > { %s1245_s19 = sadd.s32 4294967295, %s1781_s18   ;;  %p1249_p0 = scmp.ge.s32.totalorder %s1781_s18, 1  ;;  %s1781_s18 = sphi %s1836_s18, %s16_s18  }
   0x2   : > { %p192_p1 = scmp.lt.s32.totalorder %s1781_s18, 3 }
   0x4   : > { %p193_p2 = pnand %p1249_p0, %p192_p1 }
   0x5   : > { %p230_p3 = scmp.lt.s32.totalorder (!%p193_p2), %s1245_s19, 1  ;;  %s1783_s24 = smov (!%p193_p2), 127   ;;  %vm274_vm0 = vcmask (!%p193_p2), 1039360   ;;  %vm560_vm1 = vcmask (!%p193_p2), 400384   ;;  %vm575_vm2 = vcmask (!%p193_p2), 392192   ;;  %vm605_vm3 = vcmask (!%p193_p2), 318464  }
   0x6   : > { %196 = sbr.rel (%p193_p2) target bundleno = 699 (0x2bb), region = 32  ;;  %s1784_s25 = smov (!%p193_p2), 49   ;;  %vm590_vm4 = vcmask (!%p193_p2), 384000   ;;  %vm620_vm5 = vcmask (!%p193_p2), 310272   ;;  %vm635_vm6 = vcmask (!%p193_p2), 302080   ;;  %vm426_vm7 = vcmask (!%p193_p2), 228352  }
   0x7   : > { %s1785_s26 = smov (!%p193_p2), 48   ;;  %s1786_s27 = smov (!%p193_p2), 47   ;;  %vm650_vm8 = vcmask (!%p193_p2), 236544   ;;  %vm445_vm9 = vcmask (!%p193_p2), 220160   ;;  %vm312_vm10 = vcmask (!%p193_p2), 965632   ;;  %vm293_vm11 = vcmask (!%p193_p2), 1031168  }
   0x8   : > { %s1787_s28 = smov (!%p193_p2), 39   ;;  %s1788_s29 = smov (!%p193_p2), 38   ;;  %vm864_vm12 = vcmask (!%p193_p2), 719872   ;;  %vm350_vm13 = vcmask (!%p193_p2), 949248   ;;  %vm331_vm14 = vcmask (!%p193_p2), 957440   ;;  %vm388_vm15 = vcmask (!%p193_p2), 875520  }
   0x9   : > { %s1789_s30 = smov (!%p193_p2), 37   ;;  %s1790_s6 = smov (!%p193_p2), 28  }
   0xa   : > { %s1791_s7 = smov (!%p193_p2), 29   ;;  %s1792_s8 = smov (!%p193_p2), 27  }
   0xb   : > { %s1793_s9 = smov (!%p193_p2), 118   ;;  %s1794_s10 = smov (!%p193_p2), 126  }
   0xc   : > { %s1795_s11 = smov (!%p193_p2), 116   ;;  %s1796_s12 = smov (!%p193_p2), 117  }
   0xd   : > { %s2220_s19 = smov (!%p230_p3, %s1245_s19), 1  ;;  %s1797_s13 = smov 107  }
   0xe   : > { %s1378_s20 = smul.u32 24, %s2220_s19  ;;  %s1798_s14 = smov 108  }
   0xf   : > { %s1799_s15 = smov 106   ;;  %s1800_s16 = smov 26  }
  0x10   : > { %s234_s23 = scalar_lea.vmem %s2213_s0, %s1378_s20  ;;  %s1801_s17 = smov 17  }
  0x11   : > { %v252_v0 = vld [vmem:[%s234_s23 + $0x10] sm:$0xff]  ;;  %v1850_v1 = vld [vmem:[%s234_s23] sm:$0xff]  ;;  %v1852_v2 = vld [vmem:[%s234_s23 + $0x8] sm:$0xff]  ;;  %s1802_s20 = smov 18   ;;  %s1803_s21 = smov 8  }
  0x12   : > { %v1854_v3 = vunpack.c.l.bf16 %v252_v0  ;;  %v254_v4 = vunpack.c.h.bf16 %v1850_v1  ;;  %v255_v5 = vunpack.c.l.bf16 %v1852_v2  ;;  %v1859_v6 = vunpack.c.h.bf16 %v1852_v2  ;;  %s1804_s22 = smov 16   ;;  %s1805_s23 = smov 7  }
  0x13   : > { %v1862_v7 = vunpack.c.l.bf16 %v1850_v1  ;;  %v258_v11 = vunpack.c.h.bf16 %v252_v0 }
  0x14   : > { %272 = vrot.lane.b32.xlu1 %v1854_v3, %s1783_s24  ;;  %v1869_v8 = vpack.i.bf16 %v255_v5, %v254_v4  ;;  %v1877_v10 = vpack.i.bf16 %v1854_v3, %v1859_v6 }
  0x15   : > { %v1415_v9 = vpack.i.bf16 %v1862_v7, %v1859_v6  ;;  %v1500_v12 = vpack.i.bf16 %v1862_v7, %v258_v11  ;;  %v1900_v13 = vpack.i.bf16 %v1859_v6, %v1862_v7 }
  0x16   : > { %1411 = vrot.lane.b32.xlu0 %v1869_v8, %s1783_s24 }
  0x18   : > { %1421 = vrot.lane.b32.xlu1 %v1869_v8, %s1784_s25 }
  0x1a   : > { %1416 = vrot.lane.b32.xlu0 %v1415_v9, %s1783_s24 }
  0x1c   : > { %1431 = vrot.lane.b32.xlu1 %v1869_v8, %s1785_s26 }
  0x1e   : > { %1426 = vrot.lane.b32.xlu0 %v1877_v10, %s1784_s25 }
  0x20   : > { %558 = vrot.lane.b32.xlu1 %v258_v11, %s1784_s25 }
  0x22   : > { %1436 = vrot.lane.b32.xlu0 %v1877_v10, %s1785_s26 }
  0x24   : > { %1441 = vrot.lane.b32.xlu1 %v1869_v8, %s1786_s27 }
  0x26   : > { %573 = vrot.lane.b32.xlu0 %v258_v11, %s1785_s26 }
  0x28   : > { %1451 = vrot.lane.b32.xlu1 %v1869_v8, %s1787_s28 }
  0x2a   : > { %1446 = vrot.lane.b32.xlu0 %v1877_v10, %s1786_s27 }
  0x2c   : > { %588 = vrot.lane.b32.xlu1 %v258_v11, %s1786_s27 }
  0x2e   : > { %1456 = vrot.lane.b32.xlu0 %v1877_v10, %s1787_s28 }
  0x30   : > { %1461 = vrot.lane.b32.xlu1 %v1869_v8, %s1788_s29 }
  0x32   : > { %603 = vrot.lane.b32.xlu0 %v258_v11, %s1787_s28 }
  0x34   : > { %1471 = vrot.lane.b32.xlu1 %v1869_v8, %s1789_s30 }
  0x36   : > { %1466 = vrot.lane.b32.xlu0 %v1877_v10, %s1788_s29 }
  0x38   : > { %618 = vrot.lane.b32.xlu1 %v258_v11, %s1788_s29 }
  0x3a   : > { %1476 = vrot.lane.b32.xlu0 %v1877_v10, %s1789_s30 }
  0x3c   : > { %1481 = vrot.lane.b32.xlu1 %v1869_v8, %s1790_s6 }
  0x3e   : > { %633 = vrot.lane.b32.xlu0 %v258_v11, %s1789_s30 }
  0x40   : > { %1491 = vrot.lane.b32.xlu1 %v1869_v8, %s1791_s7 }
  0x42   : > { %1486 = vrot.lane.b32.xlu0 %v1877_v10, %s1790_s6 }
  0x44   : > { %648 = vrot.lane.b32.xlu1 %v258_v11, %s1791_s7 }
  0x46   : > { %1496 = vrot.lane.b32.xlu0 %v1877_v10, %s1791_s7 }
  0x48   : > { %1506 = vrot.lane.b32.xlu1 %v1869_v8, %s1792_s8 }
  0x4a   : > { %1501 = vrot.lane.b32.xlu0 %v1500_v12, %s1790_s6 }
  0x4c   : > { %1516 = vrot.lane.b32.xlu1 %v1500_v12, %s1792_s8 }
  0x4e   : > { %1511 = vrot.lane.b32.xlu0 %v1877_v10, %s1792_s8 }
  0x50   : > { %1526 = vrot.lane.b32.xlu1 %v1869_v8, %s1793_s9 }
  0x52   : > { %1521 = vrot.lane.b32.xlu0 %v1869_v8, %s1794_s10 }
  0x54   : > { %1536 = vrot.lane.b32.xlu1 %v1900_v13, %s1793_s9 }
  0x56   : > { %1531 = vrot.lane.b32.xlu0 %v1900_v13, %s1794_s10 }
  0x58   : > { %310 = vrot.lane.b32.xlu1 %v1854_v3, %s1793_s9  ;;  %s1267_s9 = sshll.u32 %s2220_s19, 5 }
  0x5a   : > { %291 = vrot.lane.b32.xlu0 %v1854_v3, %s1794_s10 }
  0x5c   : > { %1546 = vrot.lane.b32.xlu1 %v1869_v8, %s1795_s11 }
  0x5e   : > { %1541 = vrot.lane.b32.xlu0 %v1869_v8, %s1796_s12 }
  0x60   : > { %1556 = vrot.lane.b32.xlu1 %v1900_v13, %s1795_s11 }
  0x62   : > { %1551 = vrot.lane.b32.xlu0 %v1900_v13, %s1796_s12 }
  0x64   : > { %348 = vrot.lane.b32.xlu1 %v1854_v3, %s1795_s11 }
  0x66   : > { %329 = vrot.lane.b32.xlu0 %v1854_v3, %s1796_s12  ;;  %s2197_s12 = scalar_lea.vmem %s2216_s3, %s1267_s9 }
  0x68   : > { %1566 = vrot.lane.b32.xlu1 %v1869_v8, %s1797_s13 }
  0x6a   : > { %1561 = vrot.lane.b32.xlu0 %v1869_v8, %s1798_s14 }
  0x6c   : > { %1576 = vrot.lane.b32.xlu1 %v1900_v13, %s1797_s13 }
  0x6e   : > { %1571 = vrot.lane.b32.xlu0 %v1900_v13, %s1798_s14 }
  0x70   : > { %386 = vrot.lane.b32.xlu1 %v1854_v3, %s1797_s13  ;;  %s1268_s13 = sshll.u32 %s2220_s19, 4 }
  0x72   : > { %367 = vrot.lane.b32.xlu0 %v1854_v3, %s1798_s14 }
  0x74   : > { %1586 = vrot.lane.b32.xlu1 %v1900_v13, %s1799_s15 }
  0x76   : > { %1581 = vrot.lane.b32.xlu0 %v1869_v8, %s1799_s15 }
  0x78   : > { %1591 = vrot.lane.b32.xlu1 %v1869_v8, %s1800_s16 }
  0x7a   : > { %405 = vrot.lane.b32.xlu0 %v1854_v3, %s1799_s15 }
  0x7c   : > { %462 = vrot.lane.b32.xlu1 %v1854_v3, %s1800_s16 }
  0x7e   : > { %1596 = vrot.lane.b32.xlu0 %v1900_v13, %s1800_s16  ;;  %s244_s16 = scalar_lea.vmem %s2217_s4, %s1268_s13 }
  0x80   : > { %1606 = vrot.lane.b32.xlu1 %v1869_v8, %s1801_s17 }
  0x82   : > { %1601 = vrot.lane.b32.xlu0 %v1869_v8, %s1802_s20 }
  0x84   : > { %1616 = vrot.lane.b32.xlu1 %v1900_v13, %s1801_s17 }
  0x86   : > { %v1928_v14 = vpop.permute.xlu1 %272  ;;  %1611 = vrot.lane.b32.xlu0 %v1900_v13, %s1802_s20 }
  0x88   : > { %v1412_v15 = vpop.permute.xlu0 %1411  ;;  %500 = vrot.lane.b32.xlu1 %v1854_v3, %s1801_s17 }
  0x89   : > { %v1414_v16 = vunpack.i.h.bf16 %v1412_v15  ;;  %v1413_v17 = vunpack.i.l.bf16 %v1412_v15 }
  0x8a   : > { %v1422_v18 = vpop.permute.xlu1 %1421  ;;  %481 = vrot.lane.b32.xlu0 %v1854_v3, %s1802_s20 }
  0x8b   : > { %v276_v19 = vsel %vm274_vm0, %v1413_v17, %v1414_v16  ;;  %v1424_v36 = vunpack.i.h.bf16 %v1422_v18  ;;  %v1423_v37 = vunpack.i.l.bf16 %v1422_v18 }
  0x8c   : > { %1626 = vrot.lane.b32.xlu1 %v1869_v8, %s1803_s21  ;;  %v1417_v20 = vpop.permute.xlu0 %1416  ;;  %v1274_v21 = vpack.c.bf16 %v276_v19, %v254_v4 }
  0x8d   : > { %v1419_v22 = vunpack.i.h.bf16 %v1417_v20  ;;  %v1418_v23 = vunpack.i.l.bf16 %v1417_v20  ;;  %v561_v41 = vsel %vm560_vm1, %v1423_v37, %v1424_v36 }
  0x8e   : > { %v1432_v24 = vpop.permute.xlu1 %1431  ;;  %1275 = vmatprep.subr.bf16.mxu0 %v1274_v21  ;;  %1621 = vrot.lane.b32.xlu0 %v1869_v8, %s1804_s22 }
  0x8f   : > { %v277_v25 = vsel %vm274_vm0, %v1414_v16, %v1418_v23  ;;  %v275_v26 = vsel %vm274_vm0, %v1419_v22, %v1413_v17  ;;  %v278_v29 = vsel %vm274_vm0, %v1418_v23, %v1928_v14  ;;  %v1434_v45 = vunpack.i.h.bf16 %v1432_v24 }
  0x90   : > { %1636 = vrot.lane.b32.xlu1 %v1900_v13, %s1803_s21  ;;  %v1427_v27 = vpop.permute.xlu0 %1426  ;;  %v1276_v28 = vpack.c.bf16 %v275_v26, %v1862_v7  ;;  %v1326_v31 = vpack.c.bf16 %v278_v29, %v1859_v6  ;;  %v1328_v32 = vpack.c.bf16 %v277_v25, %v255_v5  ;;  %v1645_v34 = vpack.i.bf16 %v277_v25, %v276_v19 }
  0x91   : > { %v1428_v38 = vunpack.i.l.bf16 %v1427_v27  ;;  %v1650_v43 = vpack.i.bf16 %v275_v26, %v1862_v7  ;;  %v1433_v47 = vunpack.i.l.bf16 %v1432_v24  ;;  %v1429_v50 = vunpack.i.h.bf16 %v1427_v27 }
  0x92   : > { %v559_v30 = vpop.permute.xlu1 %558  ;;  %1631 = vrot.lane.b32.xlu0 %v1900_v13, %s1804_s22  ;;  %1277 = vmatpush1.bf16.msra.mxu0 %v1276_v28  ;;  %v1660_v51 = vpack.i.bf16 %v1928_v14, %v278_v29  ;;  %vm369_vm0 = vcmask 883712  }
  0x93   : > { %1327 = vmatprep.subr.bf16.mxu1 %v1326_v31  ;;  %v562_v42 = vsel %vm560_vm1, %v1424_v36, %v1428_v38  ;;  %v576_v54 = vsel %vm575_vm2, %v1433_v47, %v1434_v45  ;;  %v1675_v56 = vpack.i.bf16 %v1433_v47, %v1423_v37  ;;  %v563_v61 = vsel %vm560_vm1, %v1428_v38, %v1429_v50 }
  0x94   : > { %538 = vrot.lane.b32.xlu1 %v1854_v3, %s1803_s21  ;;  %v1437_v33 = vpop.permute.xlu0 %1436  ;;  %1329 = vmatpush1.bf16.msra.mxu1 %v1328_v32  ;;  %v1665_v49 = vpack.i.bf16 %v562_v42, %v561_v41  ;;  %v564_v62 = vsel %vm560_vm1, %v1429_v50, %v559_v30  ;;  %vm407_vm1 = vcmask 867328   ;;  %s249_s21 = scalar_lea.vmem %s2218_s5, %s1268_s13 }
  0x95   : > { %v1438_v46 = vunpack.i.l.bf16 %v1437_v33  ;;  %v1439_v53 = vunpack.i.h.bf16 %v1437_v33  ;;  %v1680_v11 = vpack.i.bf16 %v564_v62, %v563_v61 }
  0x96   : > { %v1949_v35 = vpop.permute.xlu1 %1441  ;;  %519 = vrot.lane.b32.xlu0 %v1854_v3, %s1804_s22 }
  0x97   : > { %v577_v55 = vsel %vm575_vm2, %v1434_v45, %v1438_v46  ;;  %v1444_v63 = vunpack.i.h.bf16 %v1949_v35  ;;  %v1443_v2 = vunpack.i.l.bf16 %v1949_v35  ;;  %v578_v3 = vsel %vm575_vm2, %v1438_v46, %v1439_v53 }
  0x98   : > { %v574_v39 = vpop.permute.xlu0 %573  ;;  %1646 = vrot.lane.b32.xlu1 %v1645_v34, %s1805_s23  ;;  %v1670_v1 = vpack.i.bf16 %v577_v55, %v576_v54 }
  0x99   : > { %v579_v58 = vsel %vm575_vm2, %v1439_v53, %v574_v39  ;;  %v591_v13 = vsel %vm590_vm4, %v1443_v2, %v1444_v63  ;;  %vm464_vm2 = vcmask 211968  }
  0x9a   : > { %v1953_v40 = vpop.permute.xlu1 %1451  ;;  %1641 = vrot.lane.b32.xlu0 %v1869_v8, %s1805_s23  ;;  %v1685_v6 = vpack.i.bf16 %v579_v58, %v578_v3 }
  0x9b   : > { %v1454_v59 = vunpack.i.h.bf16 %v1953_v40  ;;  %v1453_v4 = vunpack.i.l.bf16 %v1953_v40 }
  0x9c   : > { %v1447_v44 = vpop.permute.xlu0 %1446  ;;  %1656 = vrot.lane.b32.xlu1 %v1877_v10, %s1805_s23 }
  0x9d   : > { %v1448_v5 = vunpack.i.l.bf16 %v1447_v44  ;;  %v1449_v7 = vunpack.i.h.bf16 %v1447_v44  ;;  %v606_v9 = vsel %vm605_vm3, %v1453_v4, %v1454_v59  ;;  %v1700_v29 = vpack.i.bf16 %v1453_v4, %v1443_v2 }
  0x9e   : > { %v589_v48 = vpop.permute.xlu1 %588  ;;  %1651 = vrot.lane.b32.xlu0 %v1650_v43, %s1805_s23 }
  0x9f   : > { %v592_v14 = vsel %vm590_vm4, %v1444_v63, %v1448_v5  ;;  %v593_v15 = vsel %vm590_vm4, %v1448_v5, %v1449_v7  ;;  %v594_v18 = vsel %vm590_vm4, %v1449_v7, %v589_v48  ;;  %vm483_vm4 = vcmask 146432  }
  0xa0   : > { %v1964_v52 = vpop.permute.xlu0 %1456  ;;  %1666 = vrot.lane.b32.xlu1 %v1665_v49, %s1805_s23  ;;  %v1690_v23 = vpack.i.bf16 %v592_v14, %v591_v13  ;;  %v1705_v24 = vpack.i.bf16 %v594_v18, %v593_v15 }
  0xa1   : > { %v1458_v60 = vunpack.i.l.bf16 %v1964_v52  ;;  %v1459_v26 = vunpack.i.h.bf16 %v1964_v52 }
  0xa2   : > { %v1969_v57 = vpop.permute.xlu1 %1461  ;;  %1661 = vrot.lane.b32.xlu0 %v1660_v51, %s1805_s23 }
  0xa3   : > { %v607_v10 = vsel %vm605_vm3, %v1454_v59, %v1458_v60  ;;  %v1464_v19 = vunpack.i.h.bf16 %v1969_v57  ;;  %v1463_v20 = vunpack.i.l.bf16 %v1969_v57  ;;  %v608_v37 = vsel %vm605_vm3, %v1458_v60, %v1459_v26 }
  0xa4   : > { %v604_v0 = vpop.permute.xlu0 %603  ;;  %1676 = vrot.lane.b32.xlu1 %v1675_v56, %s1805_s23  ;;  %v1695_v17 = vpack.i.bf16 %v607_v10, %v606_v9 }
  0xa5   : > { %v621_v27 = vsel %vm620_vm5, %v1463_v20, %v1464_v19  ;;  %v609_v31 = vsel %vm605_vm3, %v1459_v26, %v604_v0  ;;  %vm502_vm3 = vcmask 138240  }
  0xa6   : > { %v1472_v8 = vpop.permute.xlu1 %1471  ;;  %1671 = vrot.lane.b32.xlu0 %v1670_v1, %s1805_s23  ;;  %v1710_v38 = vpack.i.bf16 %v609_v31, %v608_v37 }
  0xa7   : > { %v1474_v32 = vunpack.i.h.bf16 %v1472_v8  ;;  %v1473_v34 = vunpack.i.l.bf16 %v1472_v8 }
  0xa8   : > { %v1467_v12 = vpop.permute.xlu0 %1466  ;;  %1686 = vrot.lane.b32.xlu1 %v1685_v6, %s1805_s23 }
  0xa9   : > { %v1468_v21 = vunpack.i.l.bf16 %v1467_v12  ;;  %v1469_v39 = vunpack.i.h.bf16 %v1467_v12  ;;  %v636_v42 = vsel %vm635_vm6, %v1473_v34, %v1474_v32  ;;  %v1725_v44 = vpack.i.bf16 %v1473_v34, %v1463_v20 }
  0xaa   : > { %v619_v16 = vpop.permute.xlu1 %618  ;;  %1681 = vrot.lane.b32.xlu0 %v1680_v11, %s1805_s23 }
  0xab   : > { %v622_v28 = vsel %vm620_vm5, %v1464_v19, %v1468_v21  ;;  %v623_v50 = vsel %vm620_vm5, %v1468_v21, %v1469_v39  ;;  %v624_v53 = vsel %vm620_vm5, %v1469_v39, %v619_v16  ;;  %vm540_vm5 = vcmask 64512  }
  0xac   : > { %v1477_v22 = vpop.permute.xlu0 %1476  ;;  %1696 = vrot.lane.b32.xlu1 %v1695_v17, %s1805_s23  ;;  %v1715_v36 = vpack.i.bf16 %v622_v28, %v621_v27  ;;  %v1730_v63 = vpack.i.bf16 %v624_v53, %v623_v50 }
  0xad   : > { %v1478_v33 = vunpack.i.l.bf16 %v1477_v22  ;;  %v1479_v41 = vunpack.i.h.bf16 %v1477_v22 }
  0xae   : > { %v1482_v25 = vpop.permute.xlu1 %1481  ;;  %1691 = vrot.lane.b32.xlu0 %v1690_v23, %s1805_s23  ;;  %v861_v23 = vld [vmem:[%s2214_s1 + $0x8] sm:$0xff] }
  0xaf   : > { %v637_v43 = vsel %vm635_vm6, %v1474_v32, %v1478_v33  ;;  %v1484_v46 = vunpack.i.h.bf16 %v1482_v25  ;;  %v2006_v47 = vunpack.i.l.bf16 %v1482_v25  ;;  %v638_v54 = vsel %vm635_vm6, %v1478_v33, %v1479_v41  ;;  %1257 = vmatprep.mubr.msk.f32.mxu0 %vm864_vm12, %v861_v23  ;;  %1259 = vmatprep.mubr.msk.f32.mxu1 %vm864_vm12, %v861_v23 }
  0xb0   : > { %v634_v30 = vpop.permute.xlu0 %633  ;;  %1706 = vrot.lane.b32.xlu1 %v1705_v24, %s1805_s23  ;;  %v1720_v52 = vpack.i.bf16 %v637_v43, %v636_v42 }
  0xb1   : > { %v639_v48 = vsel %vm635_vm6, %v1479_v41, %v634_v30  ;;  %v2019_v61 = vsel %vm426_vm7, %v2006_v47, %v1484_v46  ;;  %vm521_vm6 = vcmask 130048  }
  0xb2   : > { %v1996_v35 = vpop.permute.xlu1 %1491  ;;  %1701 = vrot.lane.b32.xlu0 %v1700_v29, %s1805_s23  ;;  %v1735_v57 = vpack.i.bf16 %v639_v48, %v638_v54 }
  0xb3   : > { %v1494_v55 = vunpack.i.h.bf16 %v1996_v35  ;;  %v1493_v59 = vunpack.i.l.bf16 %v1996_v35 }
  0xb4   : > { %v2000_v40 = vpop.permute.xlu0 %1486  ;;  %1716 = vrot.lane.b32.xlu1 %v1715_v36, %s1805_s23 }
  0xb5   : > { %v1488_v49 = vunpack.i.l.bf16 %v2000_v40  ;;  %v651_v1 = vsel %vm650_vm8, %v1493_v59, %v1494_v55  ;;  %v1489_v13 = vunpack.i.h.bf16 %v2000_v40  ;;  %v1750_v20 = vpack.i.bf16 %v2006_v47, %v1493_v59 }
  0xb6   : > { %v649_v45 = vpop.permute.xlu1 %648  ;;  %1711 = vrot.lane.b32.xlu0 %v1710_v38, %s1805_s23 }
  0xb7   : > { %v2024_v62 = vsel %vm426_vm7, %v1484_v46, %v1488_v49  ;;  %v2068_v33 = vsel %vm426_vm7, %v1488_v49, %v1489_v13 }
  0xb8   : > { %v1497_v51 = vpop.permute.xlu0 %1496  ;;  %1726 = vrot.lane.b32.xlu1 %v1725_v44, %s1805_s23  ;;  %v1745_v4 = vpack.i.bf16 %v2024_v62, %v2019_v61 }
  0xb9   : > { %v1498_v56 = vunpack.i.l.bf16 %v1497_v51  ;;  %v1499_v60 = vunpack.i.h.bf16 %v1497_v51 }
  0xba   : > { %v1507_v58 = vpop.permute.xlu1 %1506  ;;  %1721 = vrot.lane.b32.xlu0 %v1720_v52, %s1805_s23 }
  0xbb   : > { %v652_v2 = vsel %vm650_vm8, %v1494_v55, %v1498_v56  ;;  %v1509_v5 = vunpack.i.h.bf16 %v1507_v58  ;;  %v2036_v6 = vunpack.i.l.bf16 %v1507_v58  ;;  %v653_v7 = vsel %vm650_vm8, %v1498_v56, %v1499_v60 }
  0xbc   : > { %v2026_v0 = vpop.permute.xlu0 %1501  ;;  %1736 = vrot.lane.b32.xlu1 %v1735_v57, %s1805_s23  ;;  %v654_v8 = vsel %vm650_vm8, %v1499_v60, %v649_v45  ;;  %v1740_v11 = vpack.i.bf16 %v652_v2, %v651_v1  ;;  %vm1093_vm8 = vcmask 7168  }
  0xbd   : > { %v1503_v9 = vunpack.i.l.bf16 %v2026_v0  ;;  %v1755_v15 = vpack.i.bf16 %v654_v8, %v653_v7  ;;  %v2046_v18 = vsel %vm445_vm9, %v2036_v6, %v1509_v5 }
  0xbe   : > { %v2031_v3 = vpop.permute.xlu1 %1516  ;;  %1731 = vrot.lane.b32.xlu0 %v1730_v63, %s1805_s23 }
  0xbf   : > { %v657_v22 = vsel %vm426_vm7, %v1489_v13, %v1503_v9  ;;  %v1518_v30 = vunpack.i.l.bf16 %v2031_v3 }
  0xc0   : > { %v1512_v10 = vpop.permute.xlu0 %1511  ;;  %1746 = vrot.lane.b32.xlu1 %v1745_v4, %s1805_s23  ;;  %v1760_v37 = vpack.i.bf16 %v657_v22, %v2068_v33 }
  0xc1   : > { %v1513_v12 = vunpack.i.l.bf16 %v1512_v10  ;;  %v1514_v24 = vunpack.i.h.bf16 %v1512_v10 }
  0xc2   : > { %v1527_v14 = vpop.permute.xlu1 %1526  ;;  %1741 = vrot.lane.b32.xlu0 %v1740_v11, %s1805_s23 }
  0xc3   : > { %v1529_v16 = vunpack.i.h.bf16 %v1527_v14  ;;  %v1528_v17 = vunpack.i.l.bf16 %v1527_v14  ;;  %v2049_v19 = vsel %vm445_vm9, %v1509_v5, %v1513_v12  ;;  %v2074_v42 = vsel %vm445_vm9, %v1513_v12, %v1514_v24 }
  0xc4   : > { %v1522_v21 = vpop.permute.xlu0 %1521  ;;  %1756 = vrot.lane.b32.xlu1 %v1755_v15, %s1805_s23  ;;  %v1765_v29 = vpack.i.bf16 %v2049_v19, %v2046_v18  ;;  %v660_v44 = vsel %vm445_vm9, %v1514_v24, %v1518_v30  ;;  %v1770_v49 = vpack.i.bf16 %v2074_v42, %v2036_v6 }
  0xc5   : > { %v1524_v25 = vunpack.i.h.bf16 %v1522_v21  ;;  %v1523_v26 = vunpack.i.l.bf16 %v1522_v21  ;;  %v314_v27 = vsel %vm312_vm10, %v1528_v17, %v1529_v16 }
  0xc6   : > { %v1537_v28 = vpop.permute.xlu1 %1536  ;;  %1751 = vrot.lane.b32.xlu0 %v1750_v20, %s1805_s23 }
  0xc7   : > { %v1538_v31 = vunpack.i.l.bf16 %v1537_v28  ;;  %v295_v32 = vsel %vm293_vm11, %v1523_v26, %v1524_v25  ;;  %v1539_v34 = vunpack.i.h.bf16 %v1537_v28 }
  0xc8   : > { %v1532_v35 = vpop.permute.xlu0 %1531  ;;  %1766 = vrot.lane.b32.xlu1 %v1765_v29, %s1805_s23  ;;  %v1278_v36 = vpack.c.bf16 %v314_v27, %v295_v32 }
  0xc9   : > { %v1534_v38 = vunpack.i.h.bf16 %v1532_v35  ;;  %v1533_v39 = vunpack.i.l.bf16 %v1532_v35  ;;  %v313_v41 = vsel %vm312_vm10, %v1538_v31, %v1528_v17  ;;  %v315_v51 = vsel %vm312_vm10, %v1529_v16, %v1539_v34 }
  0xca   : > { %v311_v43 = vpop.permute.xlu1 %310  ;;  %1279 = vmatprep.subr.bf16.mxu0 %v1278_v36  ;;  %1761 = vrot.lane.b32.xlu0 %v1760_v37, %s1805_s23 }
  0xcb   : > { %v316_v40 = vsel %vm312_vm10, %v1539_v34, %v311_v43  ;;  %v294_v45 = vsel %vm293_vm11, %v1533_v39, %v1523_v26  ;;  %v296_v50 = vsel %vm293_vm11, %v1524_v25, %v1534_v38 }
  0xcc   : > { %v292_v46 = vpop.permute.xlu0 %291  ;;  %769 = vrot.lane.b32.xlu1 %v660_v44, %s1805_s23  ;;  %v1280_v48 = vpack.c.bf16 %v313_v41, %v294_v45  ;;  %v1332_v57 = vpack.c.bf16 %v315_v51, %v296_v50  ;;  %v1504_v51 = vunpack.i.h.bf16 %v2026_v0 }
  0xcd   : > { %v297_v52 = vsel %vm293_vm11, %v1534_v38, %v292_v46 }
  0xce   : > { %v1330_v53 = vpack.c.bf16 %v316_v40, %v297_v52  ;;  %v1547_v54 = vpop.permute.xlu1 %1546  ;;  %1281 = vmatpush1.bf16.msra.mxu0 %v1280_v48  ;;  %1771 = vrot.lane.b32.xlu0 %v1770_v49, %s1805_s23 }
  0xcf   : > { %v1549_v55 = vunpack.i.h.bf16 %v1547_v54  ;;  %v1548_v56 = vunpack.i.l.bf16 %v1547_v54 }
  0xd0   : > { %v1542_v58 = vpop.permute.xlu0 %1541  ;;  %1331 = vmatprep.subr.bf16.mxu1 %v1330_v53 }
  0xd1   : > { %v1544_v59 = vunpack.i.h.bf16 %v1542_v58  ;;  %v1543_v60 = vunpack.i.l.bf16 %v1542_v58  ;;  %1333 = vmatpush1.bf16.msra.mxu1 %v1332_v57  ;;  %v352_v63 = vsel %vm350_vm13, %v1548_v56, %v1549_v55 }
  0xd2   : > { %v1557_v1 = vpop.permute.xlu1 %1556 }
  0xd3   : > { %v1558_v2 = vunpack.i.l.bf16 %v1557_v1  ;;  %v333_v4 = vsel %vm331_vm14, %v1543_v60, %v1544_v59  ;;  %v1559_v5 = vunpack.i.h.bf16 %v1557_v1 }
  0xd4   : > { %v1552_v7 = vpop.permute.xlu0 %1551  ;;  %v1282_v8 = vpack.c.bf16 %v352_v63, %v333_v4  ;;  %v427_v63 = vsel %vm426_vm7, %v1504_v51, %v2006_v47  ;;  %vm771_vm7 = vcmask 56320  }
  0xd5   : > { %v1554_v9 = vunpack.i.h.bf16 %v1552_v7  ;;  %v1553_v10 = vunpack.i.l.bf16 %v1552_v7  ;;  %v351_v11 = vsel %vm350_vm13, %v1558_v2, %v1548_v56  ;;  %v353_v20 = vsel %vm350_vm13, %v1549_v55, %v1559_v5 }
  0xd6   : > { %v349_v12 = vpop.permute.xlu1 %348  ;;  %1283 = vmatprep.subr.bf16.mxu0 %v1282_v8 }
  0xd7   : > { %v354_v13 = vsel %vm350_vm13, %v1559_v5, %v349_v12  ;;  %v332_v14 = vsel %vm331_vm14, %v1553_v10, %v1543_v60  ;;  %v334_v17 = vsel %vm331_vm14, %v1544_v59, %v1554_v9  ;;  %v1519_v12 = vunpack.i.h.bf16 %v2031_v3 }
  0xd8   : > { %v330_v15 = vpop.permute.xlu0 %329  ;;  %v1284_v16 = vpack.c.bf16 %v351_v11, %v332_v14  ;;  %v1336_v26 = vpack.c.bf16 %v353_v20, %v334_v17 }
  0xd9   : > { %v335_v21 = vsel %vm331_vm14, %v1554_v9, %v330_v15 }
  0xda   : > { %v1334_v22 = vpack.c.bf16 %v354_v13, %v335_v21  ;;  %v1567_v23 = vpop.permute.xlu1 %1566  ;;  %1285 = vmatpush1.bf16.msra.mxu0 %v1284_v16  ;;  %v446_v21 = vsel %vm445_vm9, %v1519_v12, %v2036_v6 }
  0xdb   : > { %v1569_v24 = vunpack.i.h.bf16 %v1567_v23  ;;  %v1568_v25 = vunpack.i.l.bf16 %v1567_v23 }
  0xdc   : > { %v1562_v27 = vpop.permute.xlu0 %1561  ;;  %1335 = vmatprep.subr.bf16.mxu1 %v1334_v22 }
  0xdd   : > { %v1564_v28 = vunpack.i.h.bf16 %v1562_v27  ;;  %v1563_v29 = vunpack.i.l.bf16 %v1562_v27  ;;  %1337 = vmatpush1.bf16.msra.mxu1 %v1336_v26  ;;  %v390_v30 = vsel %vm388_vm15, %v1568_v25, %v1569_v24 }
  0xde   : > { %v1577_v31 = vpop.permute.xlu1 %1576 }
  0xdf   : > { %v1578_v32 = vunpack.i.l.bf16 %v1577_v31  ;;  %v371_v34 = vsel %vm369_vm0, %v1563_v29, %v1564_v28  ;;  %v1579_v35 = vunpack.i.h.bf16 %v1577_v31 }
  0xe0   : > { %v1572_v36 = vpop.permute.xlu0 %1571  ;;  %v1286_v37 = vpack.c.bf16 %v390_v30, %v371_v34 }
  0xe1   : > { %v1574_v38 = vunpack.i.h.bf16 %v1572_v36  ;;  %v1573_v39 = vunpack.i.l.bf16 %v1572_v36  ;;  %v389_v41 = vsel %vm388_vm15, %v1578_v32, %v1568_v25  ;;  %v391_v49 = vsel %vm388_vm15, %v1569_v24, %v1579_v35 }
  0xe2   : > { %v387_v43 = vpop.permute.xlu1 %386  ;;  %1287 = vmatprep.subr.bf16.mxu0 %v1286_v37 }
  0xe3   : > { %v392_v40 = vsel %vm388_vm15, %v1579_v35, %v387_v43  ;;  %v370_v44 = vsel %vm369_vm0, %v1573_v39, %v1563_v29  ;;  %v372_v48 = vsel %vm369_vm0, %v1564_v28, %v1574_v38 }
  0xe4   : > { %v368_v45 = vpop.permute.xlu0 %367  ;;  %v1288_v46 = vpack.c.bf16 %v389_v41, %v370_v44  ;;  %v1340_v55 = vpack.c.bf16 %v391_v49, %v372_v48 }
  0xe5   : > { %v373_v50 = vsel %vm369_vm0, %v1574_v38, %v368_v45 }
  0xe6   : > { %v1338_v52 = vpack.c.bf16 %v392_v40, %v373_v50  ;;  %v1587_v53 = vpop.permute.xlu1 %1586  ;;  %1289 = vmatpush1.bf16.msra.mxu0 %v1288_v46 }
  0xe7   : > { %v1588_v54 = vunpack.i.l.bf16 %v1587_v53  ;;  %v1589_v56 = vunpack.i.h.bf16 %v1587_v53 }
  0xe8   : > { %v1582_v57 = vpop.permute.xlu0 %1581  ;;  %1339 = vmatprep.subr.bf16.mxu1 %v1338_v52 }
  0xe9   : > { %v1584_v58 = vunpack.i.h.bf16 %v1582_v57  ;;  %v1583_v59 = vunpack.i.l.bf16 %v1582_v57  ;;  %1341 = vmatpush1.bf16.msra.mxu1 %v1340_v55 }
  0xea   : > { %v1592_v60 = vpop.permute.xlu1 %1591 }
  0xeb   : > { %v1594_v1 = vunpack.i.h.bf16 %v1592_v60  ;;  %v1593_v2 = vunpack.i.l.bf16 %v1592_v60  ;;  %v409_v0 = vsel %vm407_vm1, %v1583_v59, %v1584_v58  ;;  %v408_v4 = vsel %vm407_vm1, %v1588_v54, %v1583_v59 }
  0xec   : > { %v406_v5 = vpop.permute.xlu0 %405  ;;  %v1290_v7 = vpack.c.bf16 %v2019_v61, %v409_v0  ;;  %v1292_v8 = vpack.c.bf16 %v427_v63, %v408_v4  ;;  %v410_v9 = vsel %vm407_vm1, %v1584_v58, %v1589_v56 }
  0xed   : > { %v411_v10 = vsel %vm407_vm1, %v1589_v56, %v406_v5  ;;  %v466_v11 = vsel %vm464_vm2, %v1593_v2, %v1594_v1  ;;  %v1344_v15 = vpack.c.bf16 %v2024_v62, %v410_v9 }
  0xee   : > { %v1342_v13 = vpack.c.bf16 %v2068_v33, %v411_v10  ;;  %v463_v14 = vpop.permute.xlu1 %462  ;;  %1291 = vmatprep.subr.bf16.mxu0 %v1290_v7  ;;  %v1294_v47 = vpack.c.bf16 %v466_v11, %v2046_v18 }
  0xef   : > { %1293 = vmatpush1.bf16.msra.mxu0 %v1292_v8 }
  0xf0   : > { %v1597_v16 = vpop.permute.xlu0 %1596  ;;  %1295 = vmatprep.subr.bf16.mxu0 %v1294_v47  ;;  %1343 = vmatprep.subr.bf16.mxu1 %v1342_v13 }
  0xf1   : > { %v1599_v61 = vunpack.i.h.bf16 %v1597_v16  ;;  %v1598_v17 = vunpack.i.l.bf16 %v1597_v16  ;;  %1345 = vmatpush1.bf16.msra.mxu1 %v1344_v15 }
  0xf2   : > { %v1607_v20 = vpop.permute.xlu1 %1606 }
  0xf3   : > { %v1609_v3 = vunpack.i.h.bf16 %v1607_v20  ;;  %v1608_v33 = vunpack.i.l.bf16 %v1607_v20  ;;  %v465_v22 = vsel %vm464_vm2, %v1598_v17, %v1593_v2  ;;  %v468_v18 = vsel %vm464_vm2, %v1599_v61, %v463_v14 }
  0xf4   : > { %v1602_v23 = vpop.permute.xlu0 %1601  ;;  %v1296_v24 = vpack.c.bf16 %v465_v22, %v446_v21  ;;  %v1346_v62 = vpack.c.bf16 %v468_v18, %v2074_v42  ;;  %v467_v25 = vsel %vm464_vm2, %v1594_v1, %v1599_v61 }
  0xf5   : > { %v1604_v26 = vunpack.i.h.bf16 %v1602_v23  ;;  %v1603_v27 = vunpack.i.l.bf16 %v1602_v23  ;;  %v1348_v28 = vpack.c.bf16 %v467_v25, %v2049_v19  ;;  %v504_v6 = vsel %vm502_vm3, %v1608_v33, %v1609_v3 }
  0xf6   : > { %v1617_v29 = vpop.permute.xlu1 %1616  ;;  %1297 = vmatpush1.bf16.msra.mxu0 %v1296_v24  ;;  %1347 = vmatprep.subr.bf16.mxu1 %v1346_v62 }
  0xf7   : > { %v1618_v30 = vunpack.i.l.bf16 %v1617_v29  ;;  %1349 = vmatpush1.bf16.msra.mxu1 %v1348_v28  ;;  %v485_v31 = vsel %vm483_vm4, %v1603_v27, %v1604_v26  ;;  %v1619_v32 = vunpack.i.h.bf16 %v1617_v29 }
  0xf8   : > { %v1612_v34 = vpop.permute.xlu0 %1611  ;;  %v1298_v35 = vpack.c.bf16 %v504_v6, %v485_v31 }
  0xf9   : > { %v1614_v42 = vunpack.i.h.bf16 %v1612_v34  ;;  %v1613_v36 = vunpack.i.l.bf16 %v1612_v34  ;;  %v503_v37 = vsel %vm502_vm3, %v1618_v30, %v1608_v33  ;;  %v505_v44 = vsel %vm502_vm3, %v1609_v3, %v1619_v32 }
  0xfa   : > { %v501_v38 = vpop.permute.xlu1 %500  ;;  %1299 = vmatprep.subr.bf16.mxu0 %v1298_v35 }
  0xfb   : > { %v506_v19 = vsel %vm502_vm3, %v1619_v32, %v501_v38  ;;  %v484_v39 = vsel %vm483_vm4, %v1613_v36, %v1603_v27  ;;  %v486_v40 = vsel %vm483_vm4, %v1604_v26, %v1614_v42 }
  0xfc   : > { %v482_v41 = vpop.permute.xlu0 %481  ;;  %v1300_v43 = vpack.c.bf16 %v503_v37, %v484_v39  ;;  %v1352_v51 = vpack.c.bf16 %v505_v44, %v486_v40 }
  0xfd   : > { %v487_v45 = vsel %vm483_vm4, %v1614_v42, %v482_v41 }
  0xfe   : > { %v1350_v46 = vpack.c.bf16 %v506_v19, %v487_v45  ;;  %v1627_v48 = vpop.permute.xlu1 %1626  ;;  %1301 = vmatpush1.bf16.msra.mxu0 %v1300_v43 }
  0xff   : > { %v1629_v49 = vunpack.i.h.bf16 %v1627_v48  ;;  %v1628_v50 = vunpack.i.l.bf16 %v1627_v48 }
 0x100   : > { %v1622_v52 = vpop.permute.xlu0 %1621  ;;  %1351 = vmatprep.subr.bf16.mxu1 %v1350_v46 }
 0x101   : > { %v1624_v53 = vunpack.i.h.bf16 %v1622_v52  ;;  %v1623_v54 = vunpack.i.l.bf16 %v1622_v52  ;;  %1353 = vmatpush1.bf16.msra.mxu1 %v1352_v51  ;;  %v542_v55 = vsel %vm540_vm5, %v1628_v50, %v1629_v49 }
 0x102   : > { %v1637_v56 = vpop.permute.xlu1 %1636 }
 0x103   : > { %v1638_v57 = vunpack.i.l.bf16 %v1637_v56  ;;  %v523_v58 = vsel %vm521_vm6, %v1623_v54, %v1624_v53  ;;  %v1639_v59 = vunpack.i.h.bf16 %v1637_v56 }
 0x104   : > { %v1632_v60 = vpop.permute.xlu0 %1631  ;;  %v1302_v63 = vpack.c.bf16 %v542_v55, %v523_v58 }
 0x105   : > { %v1634_v1 = vunpack.i.h.bf16 %v1632_v60  ;;  %v1633_v2 = vunpack.i.l.bf16 %v1632_v60  ;;  %v541_v0 = vsel %vm540_vm5, %v1638_v57, %v1628_v50  ;;  %v543_v11 = vsel %vm540_vm5, %v1629_v49, %v1639_v59 }
 0x106   : > { %v539_v4 = vpop.permute.xlu1 %538  ;;  %1303 = vmatprep.subr.bf16.mxu0 %v1302_v63 }
 0x107   : > { %v544_v5 = vsel %vm540_vm5, %v1639_v59, %v539_v4  ;;  %v522_v7 = vsel %vm521_vm6, %v1633_v2, %v1623_v54  ;;  %v524_v10 = vsel %vm521_vm6, %v1624_v53, %v1634_v1 }
 0x108   : > { %v520_v8 = vpop.permute.xlu0 %519  ;;  %v1304_v9 = vpack.c.bf16 %v541_v0, %v522_v7  ;;  %v1356_v16 = vpack.c.bf16 %v543_v11, %v524_v10 }
 0x109   : > { %v525_v12 = vsel %vm521_vm6, %v1634_v1, %v520_v8 }
 0x10a   : > { %v1354_v13 = vpack.c.bf16 %v544_v5, %v525_v12  ;;  %1305 = vmatpush1.bf16.msra.mxu0 %v1304_v9  ;;  %v1647_v14 = vpop.permute.xlu1 %1646 }
 0x10b   : > { %v1649_v47 = vunpack.i.h.bf16 %v1647_v14  ;;  %v1648_v15 = vunpack.i.l.bf16 %v1647_v14 }
 0x10c   : > { %v1642_v61 = vpop.permute.xlu0 %1641  ;;  %1355 = vmatprep.subr.bf16.mxu1 %v1354_v13 }
 0x10d   : > { %v1644_v17 = vunpack.i.h.bf16 %v1642_v61  ;;  %v1643_v20 = vunpack.i.l.bf16 %v1642_v61  ;;  %1357 = vmatpush1.bf16.msra.mxu1 %v1356_v16  ;;  %v777_v33 = vsel %vm771_vm7, %v1648_v15, %v1649_v47 }
 0x10e   : > { %v1657_v21 = vpop.permute.xlu1 %1656 }
 0x10f   : > { %v773_v3 = vsel %vm771_vm7, %v1643_v20, %v1644_v17  ;;  %v1659_v23 = vunpack.i.h.bf16 %v1657_v21  ;;  %v1658_v26 = vunpack.i.l.bf16 %v1657_v21 }
 0x110   : > { %v1652_v22 = vpop.permute.xlu0 %1651  ;;  %v1306_v18 = vpack.c.bf16 %v777_v33, %v773_v3 }
 0x111   : > { %v1654_v24 = vunpack.i.h.bf16 %v1652_v22  ;;  %v1653_v62 = vunpack.i.l.bf16 %v1652_v22  ;;  %v775_v32 = vsel %vm771_vm7, %v1658_v26, %v1659_v23  ;;  %v774_v38 = vsel %vm771_vm7, %v1644_v17, %v1658_v26 }
 0x112   : > { %v1667_v25 = vpop.permute.xlu1 %1666  ;;  %1307 = vmatprep.subr.bf16.mxu0 %v1306_v18 }
 0x113   : > { %v772_v27 = vsel %vm771_vm7, %v1653_v62, %v1643_v20  ;;  %v776_v28 = vsel %vm771_vm7, %v1654_v24, %v1648_v15  ;;  %v1669_v34 = vunpack.i.h.bf16 %v1667_v25  ;;  %v1668_v35 = vunpack.i.l.bf16 %v1667_v25 }
 0x114   : > { %v1662_v6 = vpop.permute.xlu0 %1661  ;;  %v1308_v29 = vpack.c.bf16 %v776_v28, %v772_v27 }
 0x115   : > { %v1664_v30 = vunpack.i.h.bf16 %v1662_v6  ;;  %v1663_v31 = vunpack.i.l.bf16 %v1662_v6  ;;  %v781_v48 = vsel %vm771_vm7, %v1668_v35, %v1669_v34 }
 0x116   : > { %v1677_v42 = vpop.permute.xlu1 %1676  ;;  %1309 = vmatpush1.bf16.msra.mxu0 %v1308_v29 }
 0x117   : > { %v1678_v36 = vunpack.i.l.bf16 %v1677_v42  ;;  %v779_v37 = vsel %vm771_vm7, %v1663_v31, %v1664_v30  ;;  %v778_v19 = vsel %vm771_vm7, %v1649_v47, %v1663_v31  ;;  %v1679_v40 = vunpack.i.h.bf16 %v1677_v42 }
 0x118   : > { %v1672_v39 = vpop.permute.xlu0 %1671  ;;  %v1358_v41 = vpack.c.bf16 %v779_v37, %v775_v32  ;;  %v1360_v43 = vpack.c.bf16 %v778_v19, %v774_v38 }
 0x119   : > { %v1674_v44 = vunpack.i.h.bf16 %v1672_v39  ;;  %v1673_v45 = vunpack.i.l.bf16 %v1672_v39  ;;  %v780_v49 = vsel %vm771_vm7, %v1678_v36, %v1668_v35 }
 0x11a   : > { %v1687_v46 = vpop.permute.xlu1 %1686  ;;  %1359 = vmatprep.subr.bf16.mxu1 %v1358_v41 }
 0x11b   : > { %v1689_v50 = vunpack.i.h.bf16 %v1687_v46  ;;  %v1688_v51 = vunpack.i.l.bf16 %v1687_v46  ;;  %1361 = vmatpush1.bf16.msra.mxu1 %v1360_v43  ;;  %v785_v52 = vsel %vm771_vm7, %v1673_v45, %v1674_v44  ;;  %v784_v53 = vsel %vm771_vm7, %v1679_v40, %v1673_v45 }
 0x11c   : > { %v1682_v54 = vpop.permute.xlu0 %1681  ;;  %v1310_v55 = vpack.c.bf16 %v785_v52, %v781_v48  ;;  %v1312_v56 = vpack.c.bf16 %v784_v53, %v780_v49 }
 0x11d   : > { %v1684_v57 = vunpack.i.h.bf16 %v1682_v54  ;;  %v1683_v58 = vunpack.i.l.bf16 %v1682_v54  ;;  %v787_v60 = vsel %vm771_vm7, %v1688_v51, %v1689_v50  ;;  %v786_v63 = vsel %vm771_vm7, %v1674_v44, %v1688_v51 }
 0x11e   : > { %v1697_v59 = vpop.permute.xlu1 %1696  ;;  %1311 = vmatprep.subr.bf16.mxu0 %v1310_v55 }
 0x11f   : > { %v1699_v1 = vunpack.i.h.bf16 %v1697_v59  ;;  %v1698_v2 = vunpack.i.l.bf16 %v1697_v59  ;;  %1313 = vmatpush1.bf16.msra.mxu0 %v1312_v56  ;;  %v783_v0 = vsel %vm771_vm7, %v1683_v58, %v1684_v57  ;;  %v782_v4 = vsel %vm771_vm7, %v1669_v34, %v1683_v58 }
 0x120   : > { %v1692_v5 = vpop.permute.xlu0 %1691  ;;  %v1362_v7 = vpack.c.bf16 %v787_v60, %v783_v0  ;;  %v1364_v8 = vpack.c.bf16 %v786_v63, %v782_v4 }
 0x121   : > { %v1694_v9 = vunpack.i.h.bf16 %v1692_v5  ;;  %v1693_v10 = vunpack.i.l.bf16 %v1692_v5  ;;  %v793_v13 = vsel %vm771_vm7, %v1698_v2, %v1699_v1 }
 0x122   : > { %v1707_v11 = vpop.permute.xlu1 %1706  ;;  %1363 = vmatprep.subr.bf16.mxu1 %v1362_v7 }
 0x123   : > { %1365 = vmatpush1.bf16.msra.mxu1 %v1364_v8  ;;  %v789_v12 = vsel %vm771_vm7, %v1693_v10, %v1694_v9  ;;  %v1709_v61 = vunpack.i.h.bf16 %v1707_v11  ;;  %v1708_v17 = vunpack.i.l.bf16 %v1707_v11 }
 0x124   : > { %v1702_v14 = vpop.permute.xlu0 %1701  ;;  %v1314_v47 = vpack.c.bf16 %v793_v13, %v789_v12 }
 0x125   : > { %v1704_v15 = vunpack.i.h.bf16 %v1702_v14  ;;  %v1703_v16 = vunpack.i.l.bf16 %v1702_v14  ;;  %v791_v26 = vsel %vm771_vm7, %v1708_v17, %v1709_v61  ;;  %v790_v6 = vsel %vm771_vm7, %v1694_v9, %v1708_v17 }
 0x126   : > { %v1717_v20 = vpop.permute.xlu1 %1716  ;;  %1315 = vmatprep.subr.bf16.mxu0 %v1314_v47 }
 0x127   : > { %v788_v21 = vsel %vm771_vm7, %v1703_v16, %v1693_v10  ;;  %v792_v3 = vsel %vm771_vm7, %v1704_v15, %v1698_v2  ;;  %v1719_v24 = vunpack.i.h.bf16 %v1717_v20  ;;  %v1718_v62 = vunpack.i.l.bf16 %v1717_v20 }
 0x128   : > { %v1712_v33 = vpop.permute.xlu0 %1711  ;;  %v1316_v22 = vpack.c.bf16 %v792_v3, %v788_v21 }
 0x129   : > { %v1714_v18 = vunpack.i.h.bf16 %v1712_v33  ;;  %v1713_v23 = vunpack.i.l.bf16 %v1712_v33  ;;  %v797_v37 = vsel %vm771_vm7, %v1718_v62, %v1719_v24 }
 0x12a   : > { %v1727_v25 = vpop.permute.xlu1 %1726  ;;  %1317 = vmatpush1.bf16.msra.mxu0 %v1316_v22 }
 0x12b   : > { %v1728_v27 = vunpack.i.l.bf16 %v1727_v25  ;;  %v795_v28 = vsel %vm771_vm7, %v1713_v23, %v1714_v18  ;;  %v794_v29 = vsel %vm771_vm7, %v1699_v1, %v1713_v23  ;;  %v1729_v34 = vunpack.i.h.bf16 %v1727_v25 }
 0x12c   : > { %v1722_v30 = vpop.permute.xlu0 %1721  ;;  %v1366_v31 = vpack.c.bf16 %v795_v28, %v791_v26  ;;  %v1368_v32 = vpack.c.bf16 %v794_v29, %v790_v6  ;;  %v860_v26 = vld [vmem:[%s2214_s1] sm:$0xff]  ;;  %v863_v6 = vld [vmem:[%s2214_s1 + $0x18] sm:$0xff] }
 0x12d   : > { %v1724_v35 = vunpack.i.h.bf16 %v1722_v30  ;;  %v1723_v42 = vunpack.i.l.bf16 %v1722_v30  ;;  %v796_v38 = vsel %vm771_vm7, %v1728_v27, %v1718_v62  ;;  %v862_v30 = vld [vmem:[%s2214_s1 + $0x10] sm:$0xff] }
 0x12e   : > { %v1737_v36 = vpop.permute.xlu1 %1736  ;;  %1367 = vmatprep.subr.bf16.mxu1 %v1366_v31  ;;  %v1055_v31 = vlaneseq }
 0x12f   : > { %v1739_v19 = vunpack.i.h.bf16 %v1737_v36  ;;  %v1738_v39 = vunpack.i.l.bf16 %v1737_v36  ;;  %1369 = vmatpush1.bf16.msra.mxu1 %v1368_v32  ;;  %v801_v41 = vsel %vm771_vm7, %v1723_v42, %v1724_v35  ;;  %v800_v43 = vsel %vm771_vm7, %v1729_v34, %v1723_v42 }
 0x130   : > { %v1732_v40 = vpop.permute.xlu0 %1731  ;;  %v1318_v44 = vpack.c.bf16 %v801_v41, %v797_v37  ;;  %v1320_v45 = vpack.c.bf16 %v800_v43, %v796_v38  ;;  %v1056_v32 = vshrl.u32 %v1055_v31, 7 }
 0x131   : > { %v1734_v46 = vunpack.i.h.bf16 %v1732_v40  ;;  %v1733_v48 = vunpack.i.l.bf16 %v1732_v40  ;;  %v803_v50 = vsel %vm771_vm7, %v1738_v39, %v1739_v19  ;;  %v802_v51 = vsel %vm771_vm7, %v1724_v35, %v1738_v39  ;;  %v1053_v35 = vld [vmem:[%s2215_s2] sm:$0xf] }
 0x132   : > { %v1747_v49 = vpop.permute.xlu1 %1746  ;;  %1319 = vmatprep.subr.bf16.mxu0 %v1318_v44  ;;  %v1057_v34 = vsub.s32 0, %v1056_v32  ;;  %v1061_v42 = vsub.s32 1, %v1056_v32  ;;  %v1065_v36 = vsub.s32 2, %v1056_v32  ;;  %v1069_v19 = vsub.s32 3, %v1056_v32 }
 0x133   : > { %v1749_v52 = vunpack.i.h.bf16 %v1747_v49  ;;  %v1748_v53 = vunpack.i.l.bf16 %v1747_v49  ;;  %1321 = vmatpush1.bf16.msra.mxu0 %v1320_v45  ;;  %v799_v54 = vsel %vm771_vm7, %v1733_v48, %v1734_v46  ;;  %v798_v55 = vsel %vm771_vm7, %v1719_v24, %v1733_v48 }
 0x134   : > { %v1742_v56 = vpop.permute.xlu0 %1741  ;;  %v1370_v57 = vpack.c.bf16 %v803_v50, %v799_v54  ;;  %v1372_v58 = vpack.c.bf16 %v802_v51, %v798_v55  ;;  %v1058_v37 = vrot.slane %v1053_v35, %v1057_v34  ;;  %v1062_v38 = vrot.slane %v1053_v35, %v1061_v42 }
 0x135   : > { %v1744_v59 = vunpack.i.h.bf16 %v1742_v56  ;;  %v1743_v60 = vunpack.i.l.bf16 %v1742_v56  ;;  %v809_v2 = vsel %vm771_vm7, %v1748_v53, %v1749_v52  ;;  %v1066_v41 = vrot.slane %v1053_v35, %v1065_v36 }
 0x136   : > { %v1757_v63 = vpop.permute.xlu1 %1756  ;;  %1371 = vmatprep.subr.bf16.mxu1 %v1370_v57  ;;  %v1070_v49 = vrot.slane %v1053_v35, %v1069_v19 }
 0x137   : > { %1373 = vmatpush1.bf16.msra.mxu1 %v1372_v58  ;;  %v805_v1 = vsel %vm771_vm7, %v1743_v60, %v1744_v59  ;;  %v1759_v8 = vunpack.i.h.bf16 %v1757_v63  ;;  %v1758_v9 = vunpack.i.l.bf16 %v1757_v63 }
 0x138   : > { %v1752_v0 = vpop.permute.xlu0 %1751  ;;  %v1322_v4 = vpack.c.bf16 %v809_v2, %v805_v1 }
 0x139   : > { %v1754_v5 = vunpack.i.h.bf16 %v1752_v0  ;;  %v1753_v7 = vunpack.i.l.bf16 %v1752_v0  ;;  %v807_v20 = vsel %vm771_vm7, %v1758_v9, %v1759_v8  ;;  %v806_v3 = vsel %vm771_vm7, %v1744_v59, %v1758_v9 }
 0x13a   : > { %v1767_v10 = vpop.permute.xlu1 %1766  ;;  %1323 = vmatprep.subr.bf16.mxu0 %v1322_v4 }
 0x13b   : > { %v1769_v11 = vunpack.i.h.bf16 %v1767_v10  ;;  %v1768_v12 = vunpack.i.l.bf16 %v1767_v10  ;;  %v804_v13 = vsel %vm771_vm7, %v1753_v7, %v1743_v60  ;;  %v808_v14 = vsel %vm771_vm7, %v1754_v5, %v1748_v53 }
 0x13c   : > { %v1762_v47 = vpop.permute.xlu0 %1761  ;;  %v1324_v15 = vpack.c.bf16 %v808_v14, %v804_v13 }
 0x13d   : > { %v1764_v16 = vunpack.i.h.bf16 %v1762_v47  ;;  %v1763_v61 = vunpack.i.l.bf16 %v1762_v47  ;;  %v813_v17 = vsel %vm771_vm7, %v1768_v12, %v1769_v11 }
 0x13e   : > { %1325 = vmatpush1.bf16.msra.mxu0 %v1324_v15  ;;  %v770_v25 = vpop.permute.xlu1 %769 }
 0x13f   : > { %923 = vmatprep.subr.mxu0 %v813_v17  ;;  %v811_v21 = vsel %vm771_vm7, %v1763_v61, %v1764_v16  ;;  %v810_v33 = vsel %vm771_vm7, %v1749_v52, %v1763_v61 }
 0x140   : > { %v1772_v22 = vpop.permute.xlu0 %1771  ;;  %v1374_v18 = vpack.c.bf16 %v811_v21, %v807_v20  ;;  %v1376_v23 = vpack.c.bf16 %v810_v33, %v806_v3 }
 0x141   : > { %v1774_v24 = vunpack.i.h.bf16 %v1772_v22  ;;  %v1773_v62 = vunpack.i.l.bf16 %v1772_v22 }
 0x142   : > { %1375 = vmatprep.subr.bf16.mxu1 %v1374_v18 }
 0x143   : > { %1377 = vmatpush1.bf16.msra.mxu1 %v1376_v23  ;;  %v812_v27 = vsel %vm771_vm7, %v1773_v62, %v1768_v12  ;;  %v815_v28 = vsel %vm771_vm7, %v1774_v24, %v770_v25  ;;  %v814_v29 = vsel %vm771_vm7, %v1769_v11, %v1774_v24 }
 0x144   : > { %924 = vmatpush1.msra.mxu0 %v812_v27  ;;  %1000 = vmatprep.subr.mxu1 %v815_v28 }
 0x145   : > { %936 = vmatmul.mubr.f32.vlgmr.msra.gmra.mrb[0].mxu0 %v860_v26 }
 0x146   : > { %1258 = vmatprep.mubr.msk.f32.mxu0 %vm864_vm12, %v863_v6 }
 0x147   : > { %1001 = vmatpush1.msra.mxu1 %v814_v29 }
 0x148   : > { %1013 = vmatmul.mubr.f32.vlgmr.msra.gmra.mrb[0].mxu1 %v860_v26 }
 0x149   : > { %942 = vmatmul.mubr.f32.gmra.mrb[2].mxu0 %v862_v30  ;;  %1260 = vmatprep.mubr.msk.f32.mxu1 %vm864_vm12, %v863_v6 }
 0x14c   : > { %1019 = vmatmul.mubr.f32.gmra.mrb[2].mxu1 %v862_v30 }
 0x218   : > { %v937_v39 = vpop.f32.mrb[0].mxu0 }
 0x219   : > { %v1075_v43 = vmul.f32 %v1058_v37, %v937_v39  ;;  %v1096_v40 = vmul.f32 %v937_v39, %v937_v39  ;;  %v939_v44 = vpop.f32.mrb[1].mxu0 }
 0x21a   : > { %v1270_v45 = vpack.c.bf16 %v939_v44, %v937_v39  ;;  %v1076_v46 = vmul.f32 %v1062_v38, %v939_v44  ;;  %v1097_v48 = vmul.f32 %v939_v44, %v939_v44 }
 0x21b   : > { %v1104_v50 = vmul.f32 %v1096_v40, %v1058_v37  ;;  %v1014_v51 = vpop.f32.mrb[0].mxu1 }
 0x21c   : > { %1049 = vst [vmem:[%s2197_s12] sm:$0xff] %v1270_v45  ;;  %v1105_v52 = vmul.f32 %v1097_v48, %v1062_v38  ;;  %v1077_v53 = vmul.f32 %v1066_v41, %v1014_v51  ;;  %v1098_v54 = vmul.f32 %v1014_v51, %v1014_v51  ;;  %v943_v55 = vpop.f32.mrb[2].mxu0  ;;  %v1016_v56 = vpop.f32.mrb[1].mxu1  ;;  %v1083_v57 = vadd.f32 %v1076_v46, %v1075_v43 }
 0x21d   : > { %v1079_v58 = vmul.f32 %v1058_v37, %v943_v55  ;;  %v1100_v59 = vmul.f32 %v943_v55, %v943_v55  ;;  %v1271_v60 = vpack.c.bf16 %v1016_v56, %v1014_v51  ;;  %v1099_v63 = vmul.f32 %v1016_v56, %v1016_v56  ;;  %v945_v1 = vpop.f32.mrb[3].mxu0 }
 0x21e   : > { %v1272_v2 = vpack.c.bf16 %v945_v1, %v943_v55  ;;  %v1080_v0 = vmul.f32 %v1062_v38, %v945_v1  ;;  %v1101_v4 = vmul.f32 %v945_v1, %v945_v1  ;;  %v1078_v5 = vmul.f32 %v1070_v49, %v1016_v56 }
 0x21f   : > { %v1108_v7 = vmul.f32 %v1100_v59, %v1058_v37  ;;  %1050 = vst [vmem:[%s2197_s12 + $0x8] sm:$0xff] %v1271_v60  ;;  %v1020_v8 = vpop.f32.mrb[2].mxu1  ;;  %v1084_v9 = vadd.f32 %v1083_v57, %v1077_v53  ;;  %v1106_v10 = vmul.f32 %v1098_v54, %v1066_v41  ;;  %v1107_v11 = vmul.f32 %v1099_v63, %v1070_v49 }
 0x220   : > { %1051 = vst [vmem:[%s2197_s12 + $0x10] sm:$0xff] %v1272_v2  ;;  %v1088_v12 = vadd.f32 %v1080_v0, %v1079_v58  ;;  %v1109_v13 = vmul.f32 %v1101_v4, %v1062_v38  ;;  %v1081_v14 = vmul.f32 %v1066_v41, %v1020_v8  ;;  %v1102_v47 = vmul.f32 %v1020_v8, %v1020_v8  ;;  %v1022_v15 = vpop.f32.mrb[3].mxu1 }
 0x221   : > { %v1273_v16 = vpack.c.bf16 %v1022_v15, %v1020_v8  ;;  %v1082_v61 = vmul.f32 %v1070_v49, %v1022_v15  ;;  %v1103_v17 = vmul.f32 %v1022_v15, %v1022_v15  ;;  %v1085_v20 = vadd.f32 %v1084_v9, %v1078_v5 }
 0x222   : > { %v1117_v21 = vadd.f32 %v1109_v13, %v1108_v7  ;;  %v1110_v3 = vmul.f32 %v1102_v47, %v1066_v41  ;;  %v1112_v33 = vadd.f32 %v1105_v52, %v1104_v50  ;;  %v1089_v22 = vadd.f32 %v1088_v12, %v1081_v14 }
 0x223   : > { %1052 = vst [vmem:[%s2197_s12 + $0x18] sm:$0xff] %v1273_v16  ;;  %v1111_v18 = vmul.f32 %v1103_v17, %v1070_v49  ;;  %1086 = vadd.xlane.f32.xlu0 %v1085_v20 }
 0x224   : > { %v1113_v23 = vadd.f32 %v1112_v33, %v1106_v10  ;;  %v1090_v24 = vadd.f32 %v1089_v22, %v1082_v61  ;;  %v1118_v62 = vadd.f32 %v1117_v21, %v1110_v3 }
 0x226   : > { %v1114_v25 = vadd.f32 %v1113_v23, %v1107_v11  ;;  %1091 = vadd.xlane.f32.xlu1 %v1090_v24  ;;  %v1119_v26 = vadd.f32 %v1118_v62, %v1111_v18 }
 0x228   : > { %1115 = vadd.xlane.f32.xlu0 %v1114_v25 }
 0x22c   : > { %1120 = vadd.xlane.f32.xlu0 %v1119_v26 }
 0x2b0   : > { %v1087_v27 = vpop.xlane.xlu0 %1086 }
 0x2b1   : > { %1094 = vst.msk [vmem:[%s244_s16] sm:$0xff] %vm1093_vm8, %v1087_v27 }
 0x2b3   : > { %v1092_v28 = vpop.xlane.xlu1 %1091 }
 0x2b4   : > { %1095 = vst.msk [vmem:[%s244_s16 + $0x8] sm:$0xff] %vm1093_vm8, %v1092_v28 }
 0x2b5   : > { %v1116_v6 = vpop.xlane.xlu0 %1115 }
 0x2b6   : > { %1122 = vst.msk [vmem:[%s249_s21] sm:$0xff] %vm1093_vm8, %v1116_v6 }
 0x2b9   : > { %v1121_v29 = vpop.xlane.xlu0 %1120 }
 0x2ba   : > { %1123 = vst.msk [vmem:[%s249_s21 + $0x8] sm:$0xff] %vm1093_vm8, %v1121_v29 }
 0x2bb PF: > { %s16_s18 = sadd.s32 1, %s1781_s18  }
 0x2bc   : > { %p13_p4 = scmp.ge.s32.totalorder %s16_s18, 4  }
 0x2be   :  { %15 = sbr.rel (!%p13_p4) target bundleno = 1 (0x1), region = 86 }

// kernel: fire_forward.7
= control target key start
LH: loop header
LB: loop body
LE: loop exit
PB: predicated region body
PF: predicated region fallthrough
CT: control target
= control target key end

     0   :  { %s555_s15 = smov 0   ;;  %s557_s16 = smov 0   ;;  %s631_s0 = inlined_call_operand.vmem [shape: bf16[2,16,512], index: 0, kind: input, shape index: {}]   ;;  %s632_s1 = inlined_call_operand.vmem [shape: f32[16,1], index: 1, kind: input, shape index: {}]   ;;  %s633_s2 = inlined_call_operand.vmem [shape: f32[16,1], index: 2, kind: input, shape index: {}]   ;;  %s634_s3 = inlined_call_operand.vmem [shape: f32[2,16,512], index: 3, kind: input, shape index: {}]   ;;  %s635_s4 = inlined_call_operand.vmem [shape: f32[2,16,512], index: 4, kind: output, shape index: {}]  }
   0x1   :  { %s559_s17 = smov 0  }
   0x2 LB: > { %s26_s18 = sadd.s32 1, %s523_s16  ;;  %p466_p0 = scmp.ge.s32.totalorder %s527_s17, 1  ;;  %s527_s17 = sphi %s559_s17, %s14_s17   ;;  %s523_s16 = sphi %s557_s16, %s637_s16   ;;  %s519_s15 = sphi %s555_s15, %s636_s15  }
   0x3   : > { %p28_p1 = scmp.ge.s32.totalorder %s26_s18, 2  ;;  %p200_p2 = scmp.lt.s32.totalorder %s527_s17, 3 }
   0x5   : > { %s639_s18 = smov (%p28_p1, %s26_s18), 0  ;;  %p201_p3 = pnand %p466_p0, %p200_p2 }
   0x6   : > { %v305_v0 = vld [vmem:[%s633_s2] sm:$0xff] (!%p201_p3)  ;;  %v529_v2 = vmov (!%p201_p3), 0   ;;  %v306_v3 = vld [vmem:[%s633_s2 + $0x8] sm:$0xff] (!%p201_p3)  ;;  %p244_p4 = scmp.lt.s32.totalorder (!%p201_p3), %s519_s15, 1 }
   0x7   : > { %204 = sbr.rel (%p201_p3) target bundleno = 151 (0x97), region = 36  ;;  %v285_v1 = vld [vmem:[%s632_s1] sm:$0xff] (!%p201_p3)  ;;  %504 = vset.pattern.permute.xlu1 (!%p201_p3), %v529_v2  ;;  %503 = vset.pattern.permute.xlu0 (!%p201_p3), %v529_v2  ;;  %v286_v4 = vld [vmem:[%s632_s1 + $0x8] sm:$0xff] (!%p201_p3) }
   0x8   : > { %309 = vperm.xlu1 (!%p201_p3), %504, %v305_v0   ;;  %289 = vperm.xlu0 (!%p201_p3), %503, %v285_v1  }
   0xc   : > { %314 = vperm.xlu1 (!%p201_p3), %504, %v306_v3   ;;  %294 = vperm.xlu0 (!%p201_p3), %503, %v286_v4  }
   0xe   : > { %s641_s15 = smov (!%p244_p4, %s519_s15), 1 }
   0xf   : > { %s475_s27 = sshll.u32 %s641_s15, 5  ;;  %s476_s5 = sshll.u32 %s641_s15, 6 }
  0x10   : > { %s251_s30 = scalar_lea.vmem %s631_s0, %s475_s27  ;;  %s597_s8 = scalar_lea.vmem %s634_s3, %s476_s5 }
  0x11   : > { %v273_v5 = vld [vmem:[%s251_s30] sm:$0xff]  ;;  %v274_v6 = vld [vmem:[%s251_s30 + $0x8] sm:$0xff]  ;;  %v275_v11 = vld [vmem:[%s251_s30 + $0x10] sm:$0xff]  ;;  %s608_s11 = scalar_lea.vmem %s635_s4, %s476_s5 }
  0x12   : > { %v277_v7 = vunpack.c.l.bf16 %v273_v5  ;;  %v278_v8 = vunpack.c.h.bf16 %v273_v5  ;;  %v279_v9 = vunpack.c.l.bf16 %v274_v6  ;;  %v280_v10 = vunpack.c.h.bf16 %v274_v6  ;;  %v276_v12 = vld [vmem:[%s251_s30 + $0x18] sm:$0xff]  ;;  %v325_v19 = vld [vmem:[%s597_s8] sm:$0xff]  ;;  %v326_v20 = vld [vmem:[%s597_s8 + $0x8] sm:$0xff] }
  0x13   : > { %v327_v21 = vld [vmem:[%s597_s8 + $0x10] sm:$0xff]  ;;  %v328_v22 = vld [vmem:[%s597_s8 + $0x18] sm:$0xff]  ;;  %v281_v23 = vunpack.c.l.bf16 %v275_v11  ;;  %v282_v24 = vunpack.c.h.bf16 %v275_v11  ;;  %v283_v25 = vunpack.c.l.bf16 %v276_v12  ;;  %v284_v26 = vunpack.c.h.bf16 %v276_v12  ;;  %v329_v40 = vld [vmem:[%s597_s8 + $0x20] sm:$0xff] }
  0x14   : > { %v330_v41 = vld [vmem:[%s597_s8 + $0x28] sm:$0xff]  ;;  %v331_v47 = vld [vmem:[%s597_s8 + $0x30] sm:$0xff]  ;;  %v332_v48 = vld [vmem:[%s597_s8 + $0x38] sm:$0xff] }
  0x87   : > { %v290_v13 = vpop.permute.xlu0 %289  ;;  %v310_v14 = vpop.permute.xlu1 %309 }
  0x88   : > { %v297_v15 = vmul.f32 %v290_v13, %v277_v7  ;;  %v298_v16 = vmul.f32 %v290_v13, %v278_v8  ;;  %v299_v17 = vmul.f32 %v290_v13, %v279_v9  ;;  %v300_v18 = vmul.f32 %v290_v13, %v280_v10 }
  0x8a   : > { %v317_v27 = vadd.f32 %v310_v14, %v297_v15  ;;  %v318_v28 = vadd.f32 %v310_v14, %v298_v16  ;;  %v319_v29 = vadd.f32 %v310_v14, %v299_v17  ;;  %v320_v30 = vadd.f32 %v310_v14, %v300_v18 }
  0x8b   : > { %v295_v31 = vpop.permute.xlu0 %294  ;;  %v315_v46 = vpop.permute.xlu1 %314 }
  0x8c   : > { %v333_v32 = vadd.f32 %v325_v19, %v317_v27  ;;  %v334_v33 = vadd.f32 %v326_v20, %v318_v28  ;;  %v335_v34 = vadd.f32 %v327_v21, %v319_v29  ;;  %v336_v35 = vadd.f32 %v328_v22, %v320_v30 }
  0x8d   : > { %v301_v36 = vmul.f32 %v295_v31, %v281_v23  ;;  %v302_v37 = vmul.f32 %v295_v31, %v282_v24  ;;  %v303_v38 = vmul.f32 %v295_v31, %v283_v25  ;;  %v304_v39 = vmul.f32 %v295_v31, %v284_v26 }
  0x8e   : > { %v341_v42 = vmax.f32 %v333_v32, 0.0  ;;  %v342_v43 = vmax.f32 %v334_v33, 0.0  ;;  %v343_v44 = vmax.f32 %v335_v34, 0.0  ;;  %v344_v45 = vmax.f32 %v336_v35, 0.0 }
  0x8f   : > { %v321_v49 = vadd.f32 %v315_v46, %v301_v36  ;;  %v322_v50 = vadd.f32 %v315_v46, %v302_v37  ;;  %v323_v51 = vadd.f32 %v315_v46, %v303_v38  ;;  %v324_v52 = vadd.f32 %v315_v46, %v304_v39 }
  0x90   : > { %349 = vst [vmem:[%s608_s11] sm:$0xff] %v341_v42  ;;  %350 = vst [vmem:[%s608_s11 + $0x8] sm:$0xff] %v342_v43 }
  0x91   : > { %351 = vst [vmem:[%s608_s11 + $0x10] sm:$0xff] %v343_v44  ;;  %352 = vst [vmem:[%s608_s11 + $0x18] sm:$0xff] %v344_v45  ;;  %v337_v53 = vadd.f32 %v329_v40, %v321_v49  ;;  %v338_v54 = vadd.f32 %v330_v41, %v322_v50  ;;  %v339_v55 = vadd.f32 %v331_v47, %v323_v51 }
  0x92   : > { %v340_v56 = vadd.f32 %v332_v48, %v324_v52 }
  0x93   : > { %v345_v57 = vmax.f32 %v337_v53, 0.0  ;;  %v346_v58 = vmax.f32 %v338_v54, 0.0  ;;  %v347_v59 = vmax.f32 %v339_v55, 0.0 }
  0x94   : > { %v348_v60 = vmax.f32 %v340_v56, 0.0 }
  0x95   : > { %353 = vst [vmem:[%s608_s11 + $0x20] sm:$0xff] %v345_v57  ;;  %354 = vst [vmem:[%s608_s11 + $0x28] sm:$0xff] %v346_v58 }
  0x96   : > { %355 = vst [vmem:[%s608_s11 + $0x30] sm:$0xff] %v347_v59  ;;  %356 = vst [vmem:[%s608_s11 + $0x38] sm:$0xff] %v348_v60 }
  0x97 PF: > { %s14_s17 = sadd.s32 1, %s527_s17   ;;  %s636_s15 = smov %s523_s16 }
  0x98   : > { %p11_p5 = scmp.ge.s32.totalorder %s14_s17, 4   ;;  %s637_s16 = smov %s639_s18 }
  0x9a   :  { %13 = sbr.rel (!%p11_p5) target bundleno = 2 (0x2), region = 69 }

</bundles_post_ra>
